<compile_context>
chip_gen: v6e
topology: v6e:2x2x1
jax: 0.10.0
libtpu: 0.0.40
codegen_flags: <defaults>
</compile_context>

<pallas_src>
import functools

import jax
import jax.numpy as jnp
from jax.experimental import pallas as pl
from jax.experimental.pallas import tpu as pltpu


# --------------------------------------------------------------------------
# Fused Pallas kernel: LSTM stack + Linear head in one invocation
# --------------------------------------------------------------------------
def _fused_forward_kernel(n_layers, x_ref, *args):
    """Fused forward pass.

    Argument layout (after x_ref):
      [wih_0, whh_0, b_0, ..., wih_{L-1}, whh_{L-1}, b_{L-1},   # per-layer weights
       wlin, blin, h0, c0,                                      # remaining inputs
       out, hT, cT,                                             # outputs
       ys]                                                      # VMEM scratch (T*B, H)

    Shapes:
      x:    (T*B, 1)   time-major input column
      wih0: (1, 4H)    wih_l (H, 4H)   whh_l (H, 4H)   b_l (1, 4H)  (b_ih + b_hh)
      wlin: (T, H)     blin (1, 1)     h0/c0 (L, B, H)
      out:  (B, 1)     hT/cT (L, B, H)
    """
    w_refs = args[:3 * n_layers]
    (wlin_ref, blin_ref, h0_ref, c0_ref,
     out_ref, hT_ref, cT_ref, ys_ref) = args[3 * n_layers:]

    L, B, H = h0_ref.shape
    TB = x_ref.shape[0]
    T = TB // B

    wlin = wlin_ref[...]                               # (T, H), loaded once
    acc = jnp.zeros((B, H), jnp.float32)               # Linear-head accumulator

    for layer in range(n_layers):                      # static unroll over layers
        wih_ref, whh_ref, b_ref = w_refs[3 * layer:3 * layer + 3]
        whh = whh_ref[...]                             # (H, 4H), loaded once
        bias = b_ref[...]                              # (1, 4H)

        # ---- hoisted input projection (+ bias), off the recurrent chain ----
        if layer == 0:
            # D_in == 1: projection is an outer product -> VPU broadcast multiply.
            gx = x_ref[...] * wih_ref[...] + bias      # (T*B, 4H)
        else:
            gx = jnp.dot(ys_ref[...], wih_ref[...],
                         preferred_element_type=jnp.float32) + bias   # (T*B, 4H)

        h = h0_ref[layer]                              # (B, H)
        c = c0_ref[layer]                              # (B, H)
        last = layer == n_layers - 1

        for t in range(T):                             # static unroll over time
            gates = gx[t * B:(t + 1) * B, :] + jnp.dot(
                h, whh, preferred_element_type=jnp.float32)            # (B, 4H)
            s = jax.nn.sigmoid(gates)                  # full-vreg EUP op
            i = s[:, 0 * H:1 * H]
            f = s[:, 1 * H:2 * H]
            o = s[:, 3 * H:4 * H]
            g = jnp.tanh(gates[:, 2 * H:3 * H])
            c = f * c + i * g
            h = o * jnp.tanh(c)
            if last:
                # Fold the Linear head into the recurrence: y never materializes.
                acc = acc + h * wlin[t:t + 1, :]
            else:
                ys_ref[t * B:(t + 1) * B, :] = h       # VMEM-resident layer output

        hT_ref[layer] = h
        cT_ref[layer] = c

    out_ref[...] = jnp.sum(acc, axis=-1, keepdims=True) + blin_ref[...]


# --------------------------------------------------------------------------
# Wrapper around pallas_call
# --------------------------------------------------------------------------
def fused_forward(x_col, lstm_params, w_lin_rows, b_lin, h0, c0):
    """x_col: (T*B, 1) time-major input column; returns (out, hT, cT)."""
    L, B, H = h0.shape
    TB = x_col.shape[0]

    flat_w = []
    for (w_ih_t, w_hh_t, b) in lstm_params:
        flat_w += [w_ih_t, w_hh_t, b]

    n_inputs = 1 + 3 * L + 4
    vmem = pltpu.MemorySpace.VMEM

    return pl.pallas_call(
        functools.partial(_fused_forward_kernel, L),
        out_shape=(
            jax.ShapeDtypeStruct((B, 1), jnp.float32),     # linear output
            jax.ShapeDtypeStruct((L, B, H), jnp.float32),  # h_n
            jax.ShapeDtypeStruct((L, B, H), jnp.float32),  # c_n
        ),
        in_specs=[pl.BlockSpec(memory_space=vmem)] * n_inputs,
        out_specs=(
            pl.BlockSpec(memory_space=vmem),
            pl.BlockSpec(memory_space=vmem),
            pl.BlockSpec(memory_space=vmem),
        ),
        scratch_shapes=[pltpu.VMEM((TB, H), jnp.float32)],  # inter-layer activations
    )(x_col, *flat_w, w_lin_rows, b_lin, h0, c0)


# --------------------------------------------------------------------------
# Parameter construction (deterministic, PyTorch-style uniform init)
# --------------------------------------------------------------------------
def init_params(key, n_hidden, window, n_layers):
    params = {"lstm": []}
    k = 1.0 / float(n_hidden) ** 0.5
    for layer in range(n_layers):
        d_in = 1 if layer == 0 else n_hidden
        key, k1, k2, k3, k4 = jax.random.split(key, 5)
        w_ih = jax.random.uniform(k1, (4 * n_hidden, d_in), jnp.float32, -k, k)
        w_hh = jax.random.uniform(k2, (4 * n_hidden, n_hidden), jnp.float32, -k, k)
        b_ih = jax.random.uniform(k3, (4 * n_hidden,), jnp.float32, -k, k)
        b_hh = jax.random.uniform(k4, (4 * n_hidden,), jnp.float32, -k, k)
        params["lstm"].append(
            (w_ih.T, w_hh.T, (b_ih + b_hh).reshape(1, 4 * n_hidden)))
    in_feat = n_hidden * window
    kl = 1.0 / float(in_feat) ** 0.5
    key, k5, k6 = jax.random.split(key, 3)
    w_lin = jax.random.uniform(k5, (1, in_feat), jnp.float32, -kl, kl)
    b_lin = jax.random.uniform(k6, (1,), jnp.float32, -kl, kl)
    params["w_lin_rows"] = w_lin.reshape(window, n_hidden)   # (T, H) row t = weights of step t
    params["b_lin"] = b_lin.reshape(1, 1)
    return params


# --------------------------------------------------------------------------
# Forward pass (matches TimeSeriesPredictor.forward semantics)
# --------------------------------------------------------------------------
@functools.partial(jax.jit, static_argnames=("n_hidden", "n_layers"))
def forward(params, batch, n_hidden, n_layers, state=None, target=None):
    B, T = batch.shape
    # batch.unsqueeze(2) -> (B, T, 1); convert to time-major column (T*B, 1)
    x_col = jnp.transpose(batch.astype(jnp.float32), (1, 0)).reshape(T * B, 1)

    if state is None:
        h0 = jnp.zeros((n_layers, B, n_hidden), jnp.float32)
        c0 = jnp.zeros((n_layers, B, n_hidden), jnp.float32)
    else:
        h0, c0 = state

    # TODO(synk): inter-layer dropout omitted (inference / eval semantics).
    out, hT, cT = fused_forward(
        x_col, params["lstm"], params["w_lin_rows"], params["b_lin"], h0, c0)
    new_state = (hT, cT)

    if target is not None:
        loss = jnp.mean((out - target[:, None]) ** 2)          # MSELoss
        return out, new_state, loss
    return out, new_state


# --------------------------------------------------------------------------
# Pure-JAX reference (for correctness verification)
# --------------------------------------------------------------------------
def reference_forward(params, batch, n_hidden, n_layers, target):
    B, T = batch.shape
    layer_in = batch.astype(jnp.float32)[:, :, None]           # (B, T, 1)
    hs, cs = [], []
    for l in range(n_layers):
        w_ih_t, w_hh_t, b = params["lstm"][l]
        h = jnp.zeros((B, n_hidden), jnp.float32)
        c = jnp.zeros((B, n_hidden), jnp.float32)
        outs = []
        for t in range(T):
            gates = layer_in[:, t, :] @ w_ih_t + h @ w_hh_t + b
            i = jax.nn.sigmoid(gates[:, 0 * n_hidden:1 * n_hidden])
            f = jax.nn.sigmoid(gates[:, 1 * n_hidden:2 * n_hidden])
            g = jnp.tanh(gates[:, 2 * n_hidden:3 * n_hidden])
            o = jax.nn.sigmoid(gates[:, 3 * n_hidden:4 * n_hidden])
            c = f * c + i * g
            h = o * jnp.tanh(c)
            outs.append(h)
        layer_in = jnp.stack(outs, axis=1)                      # (B, T, H)
        hs.append(h)
        cs.append(c)
    flat = layer_in.reshape(B, T * n_hidden)
    w_lin = params["w_lin_rows"].reshape(T * n_hidden, 1)
    out = flat @ w_lin + params["b_lin"]
    loss = jnp.mean((out - target[:, None]) ** 2)
    return out, (jnp.stack(hs, 0), jnp.stack(cs, 0)), loss


# --------------------------------------------------------------------------
if __name__ == "__main__":
    n_hidden = 32
    window = 8
    n_layers = 2
    batch_size = 2

    key = jax.random.PRNGKey(0)
    pkey, dkey, tkey = jax.random.split(key, 3)

    params = init_params(pkey, n_hidden, window, n_layers)
    batch = jax.random.normal(dkey, (batch_size, window), jnp.float32)
    target = jax.random.normal(tkey, (batch_size,), jnp.float32)

    out, state, loss = forward(params, batch, n_hidden, n_layers,
                               state=None, target=target)
    jax.block_until_ready((out, state, loss))

    assert out.shape == (batch_size, 1)
    assert state[0].shape == (n_layers, batch_size, n_hidden)
    assert state[1].shape == (n_layers, batch_size, n_hidden)
    assert loss.shape == ()

    # Correctness check against a pure-JAX reference of the PyTorch module.
    ref_out, ref_state, ref_loss = reference_forward(
        params, batch, n_hidden, n_layers, target)
    assert jnp.allclose(out, ref_out, rtol=1e-4, atol=1e-4)
    assert jnp.allclose(state[0], ref_state[0], rtol=1e-4, atol=1e-4)
    assert jnp.allclose(state[1], ref_state[1], rtol=1e-4, atol=1e-4)
    assert jnp.allclose(loss, ref_loss, rtol=1e-4, atol=1e-4)

    print("KERNEL_OK")
</pallas_src>

<mosaic_0001>
module attributes {stable_mosaic.version = 11 : i64} {
  func.func @_fused_forward_kernel(%arg0: memref<16x1xf32, #tpu.memory_space<vmem>>, %arg1: memref<1x128xf32, #tpu.memory_space<vmem>>, %arg2: memref<32x128xf32, #tpu.memory_space<vmem>>, %arg3: memref<1x128xf32, #tpu.memory_space<vmem>>, %arg4: memref<32x128xf32, #tpu.memory_space<vmem>>, %arg5: memref<32x128xf32, #tpu.memory_space<vmem>>, %arg6: memref<1x128xf32, #tpu.memory_space<vmem>>, %arg7: memref<8x32xf32, #tpu.memory_space<vmem>>, %arg8: memref<1x1xf32, #tpu.memory_space<vmem>>, %arg9: memref<2x2x32xf32, #tpu.memory_space<vmem>>, %arg10: memref<2x2x32xf32, #tpu.memory_space<vmem>>, %arg11: memref<2x1xf32, #tpu.memory_space<vmem>>, %arg12: memref<2x2x32xf32, #tpu.memory_space<vmem>>, %arg13: memref<2x2x32xf32, #tpu.memory_space<vmem>>, %arg14: memref<16x32xf32, #tpu.memory_space<vmem>>) attributes {dimension_semantics = [], scalar_prefetch = 0 : i64, scratch_operands = 1 : i64, tpu.core_type = #tpu.core_type<tc>} {
    %c0 = arith.constant 0 : index
    %c0_0 = arith.constant 0 : index
    %0 = vector.load %arg7[%c0, %c0_0] : memref<8x32xf32, #tpu.memory_space<vmem>>, vector<8x32xf32>
    %cst = arith.constant 0.000000e+00 : f32
    %1 = vector.broadcast %cst : f32 to vector<2x32xf32>
    %c0_1 = arith.constant 0 : index
    %c0_2 = arith.constant 0 : index
    %2 = vector.load %arg2[%c0_1, %c0_2] : memref<32x128xf32, #tpu.memory_space<vmem>>, vector<32x128xf32>
    %c0_3 = arith.constant 0 : index
    %c0_4 = arith.constant 0 : index
    %3 = vector.load %arg3[%c0_3, %c0_4] : memref<1x128xf32, #tpu.memory_space<vmem>>, vector<1x128xf32>
    %c0_5 = arith.constant 0 : index
    %c0_6 = arith.constant 0 : index
    %4 = vector.load %arg0[%c0_5, %c0_6] : memref<16x1xf32, #tpu.memory_space<vmem>>, vector<16x1xf32>
    %c0_7 = arith.constant 0 : index
    %c0_8 = arith.constant 0 : index
    %5 = vector.load %arg1[%c0_7, %c0_8] : memref<1x128xf32, #tpu.memory_space<vmem>>, vector<1x128xf32>
    %6 = vector.broadcast %4 : vector<16x1xf32> to vector<16x128xf32>
    %7 = vector.broadcast %5 : vector<1x128xf32> to vector<16x128xf32>
    %8 = arith.mulf %6, %7 : vector<16x128xf32>
    %9 = vector.broadcast %3 : vector<1x128xf32> to vector<16x128xf32>
    %10 = arith.addf %8, %9 : vector<16x128xf32>
    %c0_9 = arith.constant 0 : index
    %c0_10 = arith.constant 0 : index
    %c0_11 = arith.constant 0 : index
    %11 = vector.load %arg9[%c0_9, %c0_10, %c0_11] : memref<2x2x32xf32, #tpu.memory_space<vmem>>, vector<1x2x32xf32>
    %12 = vector.shape_cast %11 : vector<1x2x32xf32> to vector<2x32xf32>
    %c0_12 = arith.constant 0 : index
    %c0_13 = arith.constant 0 : index
    %c0_14 = arith.constant 0 : index
    %13 = vector.load %arg10[%c0_12, %c0_13, %c0_14] : memref<2x2x32xf32, #tpu.memory_space<vmem>>, vector<1x2x32xf32>
    %14 = vector.shape_cast %13 : vector<1x2x32xf32> to vector<2x32xf32>
    %15 = vector.extract_strided_slice %10 {offsets = [0, 0], sizes = [2, 128], strides = [1, 1]} : vector<16x128xf32> to vector<2x128xf32>
    %cst_15 = arith.constant dense<0.000000e+00> : vector<2x128xf32>
    %16 = tpu.matmul %12, %2, %cst_15 {dimension_numbers = #tpu.dot_dimension_numbers<[1], [0], [0], [1], [0, 0, 1, 1], [], []>} : vector<2x32xf32>, vector<32x128xf32>, vector<2x128xf32> -> vector<2x128xf32>
    %17 = arith.addf %15, %16 : vector<2x128xf32>
    %18 = arith.negf %17 : vector<2x128xf32>
    %19 = math.exp %18 : vector<2x128xf32>
    %cst_16 = arith.constant 1.000000e+00 : f32
    %20 = vector.broadcast %cst_16 : f32 to vector<2x128xf32>
    %21 = arith.addf %20, %19 : vector<2x128xf32>
    %22 = arith.divf %20, %21 : vector<2x128xf32>
    %23 = vector.extract_strided_slice %22 {offsets = [0, 0], sizes = [2, 32], strides = [1, 1]} : vector<2x128xf32> to vector<2x32xf32>
    %24 = vector.extract_strided_slice %22 {offsets = [0, 32], sizes = [2, 32], strides = [1, 1]} : vector<2x128xf32> to vector<2x32xf32>
    %25 = vector.extract_strided_slice %22 {offsets = [0, 96], sizes = [2, 32], strides = [1, 1]} : vector<2x128xf32> to vector<2x32xf32>
    %26 = vector.extract_strided_slice %17 {offsets = [0, 64], sizes = [2, 32], strides = [1, 1]} : vector<2x128xf32> to vector<2x32xf32>
    %27 = math.tanh %26 : vector<2x32xf32>
    %28 = arith.mulf %24, %14 : vector<2x32xf32>
    %29 = arith.mulf %23, %27 : vector<2x32xf32>
    %30 = arith.addf %28, %29 : vector<2x32xf32>
    %31 = math.tanh %30 : vector<2x32xf32>
    %32 = arith.mulf %25, %31 : vector<2x32xf32>
    %c0_17 = arith.constant 0 : index
    %c0_18 = arith.constant 0 : index
    %33 = vector.load %arg14[%c0_17, %c0_18] : memref<16x32xf32, #tpu.memory_space<vmem>>, vector<2x32xf32>
    tpu.vector_store %arg14[%c0_17, %c0_18], %32 {strides = array<i32>} : memref<16x32xf32, #tpu.memory_space<vmem>>, vector<2x32xf32>,
    %34 = vector.extract_strided_slice %10 {offsets = [2, 0], sizes = [2, 128], strides = [1, 1]} : vector<16x128xf32> to vector<2x128xf32>
    %cst_19 = arith.constant dense<0.000000e+00> : vector<2x128xf32>
    %35 = tpu.matmul %32, %2, %cst_19 {dimension_numbers = #tpu.dot_dimension_numbers<[1], [0], [0], [1], [0, 0, 1, 1], [], []>} : vector<2x32xf32>, vector<32x128xf32>, vector<2x128xf32> -> vector<2x128xf32>
    %36 = arith.addf %34, %35 : vector<2x128xf32>
    %37 = arith.negf %36 : vector<2x128xf32>
    %38 = math.exp %37 : vector<2x128xf32>
    %cst_20 = arith.constant 1.000000e+00 : f32
    %39 = vector.broadcast %cst_20 : f32 to vector<2x128xf32>
    %40 = arith.addf %39, %38 : vector<2x128xf32>
    %41 = arith.divf %39, %40 : vector<2x128xf32>
    %42 = vector.extract_strided_slice %41 {offsets = [0, 0], sizes = [2, 32], strides = [1, 1]} : vector<2x128xf32> to vector<2x32xf32>
    %43 = vector.extract_strided_slice %41 {offsets = [0, 32], sizes = [2, 32], strides = [1, 1]} : vector<2x128xf32> to vector<2x32xf32>
    %44 = vector.extract_strided_slice %41 {offsets = [0, 96], sizes = [2, 32], strides = [1, 1]} : vector<2x128xf32> to vector<2x32xf32>
    %45 = vector.extract_strided_slice %36 {offsets = [0, 64], sizes = [2, 32], strides = [1, 1]} : vector<2x128xf32> to vector<2x32xf32>
    %46 = math.tanh %45 : vector<2x32xf32>
    %47 = arith.mulf %43, %30 : vector<2x32xf32>
    %48 = arith.mulf %42, %46 : vector<2x32xf32>
    %49 = arith.addf %47, %48 : vector<2x32xf32>
    %50 = math.tanh %49 : vector<2x32xf32>
    %51 = arith.mulf %44, %50 : vector<2x32xf32>
    %c2 = arith.constant 2 : index
    %c0_21 = arith.constant 0 : index
    %52 = vector.load %arg14[%c2, %c0_21] : memref<16x32xf32, #tpu.memory_space<vmem>>, vector<2x32xf32>
    tpu.vector_store %arg14[%c2, %c0_21], %51 {strides = array<i32>} : memref<16x32xf32, #tpu.memory_space<vmem>>, vector<2x32xf32>,
    %53 = vector.extract_strided_slice %10 {offsets = [4, 0], sizes = [2, 128], strides = [1, 1]} : vector<16x128xf32> to vector<2x128xf32>
    %cst_22 = arith.constant dense<0.000000e+00> : vector<2x128xf32>
    %54 = tpu.matmul %51, %2, %cst_22 {dimension_numbers = #tpu.dot_dimension_numbers<[1], [0], [0], [1], [0, 0, 1, 1], [], []>} : vector<2x32xf32>, vector<32x128xf32>, vector<2x128xf32> -> vector<2x128xf32>
    %55 = arith.addf %53, %54 : vector<2x128xf32>
    %56 = arith.negf %55 : vector<2x128xf32>
    %57 = math.exp %56 : vector<2x128xf32>
    %cst_23 = arith.constant 1.000000e+00 : f32
    %58 = vector.broadcast %cst_23 : f32 to vector<2x128xf32>
    %59 = arith.addf %58, %57 : vector<2x128xf32>
    %60 = arith.divf %58, %59 : vector<2x128xf32>
    %61 = vector.extract_strided_slice %60 {offsets = [0, 0], sizes = [2, 32], strides = [1, 1]} : vector<2x128xf32> to vector<2x32xf32>
    %62 = vector.extract_strided_slice %60 {offsets = [0, 32], sizes = [2, 32], strides = [1, 1]} : vector<2x128xf32> to vector<2x32xf32>
    %63 = vector.extract_strided_slice %60 {offsets = [0, 96], sizes = [2, 32], strides = [1, 1]} : vector<2x128xf32> to vector<2x32xf32>
    %64 = vector.extract_strided_slice %55 {offsets = [0, 64], sizes = [2, 32], strides = [1, 1]} : vector<2x128xf32> to vector<2x32xf32>
    %65 = math.tanh %64 : vector<2x32xf32>
    %66 = arith.mulf %62, %49 : vector<2x32xf32>
    %67 = arith.mulf %61, %65 : vector<2x32xf32>
    %68 = arith.addf %66, %67 : vector<2x32xf32>
    %69 = math.tanh %68 : vector<2x32xf32>
    %70 = arith.mulf %63, %69 : vector<2x32xf32>
    %c4 = arith.constant 4 : index
    %c0_24 = arith.constant 0 : index
    %71 = vector.load %arg14[%c4, %c0_24] : memref<16x32xf32, #tpu.memory_space<vmem>>, vector<2x32xf32>
    tpu.vector_store %arg14[%c4, %c0_24], %70 {strides = array<i32>} : memref<16x32xf32, #tpu.memory_space<vmem>>, vector<2x32xf32>,
    %72 = vector.extract_strided_slice %10 {offsets = [6, 0], sizes = [2, 128], strides = [1, 1]} : vector<16x128xf32> to vector<2x128xf32>
    %cst_25 = arith.constant dense<0.000000e+00> : vector<2x128xf32>
    %73 = tpu.matmul %70, %2, %cst_25 {dimension_numbers = #tpu.dot_dimension_numbers<[1], [0], [0], [1], [0, 0, 1, 1], [], []>} : vector<2x32xf32>, vector<32x128xf32>, vector<2x128xf32> -> vector<2x128xf32>
    %74 = arith.addf %72, %73 : vector<2x128xf32>
    %75 = arith.negf %74 : vector<2x128xf32>
    %76 = math.exp %75 : vector<2x128xf32>
    %cst_26 = arith.constant 1.000000e+00 : f32
    %77 = vector.broadcast %cst_26 : f32 to vector<2x128xf32>
    %78 = arith.addf %77, %76 : vector<2x128xf32>
    %79 = arith.divf %77, %78 : vector<2x128xf32>
    %80 = vector.extract_strided_slice %79 {offsets = [0, 0], sizes = [2, 32], strides = [1, 1]} : vector<2x128xf32> to vector<2x32xf32>
    %81 = vector.extract_strided_slice %79 {offsets = [0, 32], sizes = [2, 32], strides = [1, 1]} : vector<2x128xf32> to vector<2x32xf32>
    %82 = vector.extract_strided_slice %79 {offsets = [0, 96], sizes = [2, 32], strides = [1, 1]} : vector<2x128xf32> to vector<2x32xf32>
    %83 = vector.extract_strided_slice %74 {offsets = [0, 64], sizes = [2, 32], strides = [1, 1]} : vector<2x128xf32> to vector<2x32xf32>
    %84 = math.tanh %83 : vector<2x32xf32>
    %85 = arith.mulf %81, %68 : vector<2x32xf32>
    %86 = arith.mulf %80, %84 : vector<2x32xf32>
    %87 = arith.addf %85, %86 : vector<2x32xf32>
    %88 = math.tanh %87 : vector<2x32xf32>
    %89 = arith.mulf %82, %88 : vector<2x32xf32>
    %c6 = arith.constant 6 : index
    %c0_27 = arith.constant 0 : index
    %90 = vector.load %arg14[%c6, %c0_27] : memref<16x32xf32, #tpu.memory_space<vmem>>, vector<2x32xf32>
    tpu.vector_store %arg14[%c6, %c0_27], %89 {strides = array<i32>} : memref<16x32xf32, #tpu.memory_space<vmem>>, vector<2x32xf32>,
    %91 = vector.extract_strided_slice %10 {offsets = [8, 0], sizes = [2, 128], strides = [1, 1]} : vector<16x128xf32> to vector<2x128xf32>
    %cst_28 = arith.constant dense<0.000000e+00> : vector<2x128xf32>
    %92 = tpu.matmul %89, %2, %cst_28 {dimension_numbers = #tpu.dot_dimension_numbers<[1], [0], [0], [1], [0, 0, 1, 1], [], []>} : vector<2x32xf32>, vector<32x128xf32>, vector<2x128xf32> -> vector<2x128xf32>
    %93 = arith.addf %91, %92 : vector<2x128xf32>
    %94 = arith.negf %93 : vector<2x128xf32>
    %95 = math.exp %94 : vector<2x128xf32>
    %cst_29 = arith.constant 1.000000e+00 : f32
    %96 = vector.broadcast %cst_29 : f32 to vector<2x128xf32>
    %97 = arith.addf %96, %95 : vector<2x128xf32>
    %98 = arith.divf %96, %97 : vector<2x128xf32>
    %99 = vector.extract_strided_slice %98 {offsets = [0, 0], sizes = [2, 32], strides = [1, 1]} : vector<2x128xf32> to vector<2x32xf32>
    %100 = vector.extract_strided_slice %98 {offsets = [0, 32], sizes = [2, 32], strides = [1, 1]} : vector<2x128xf32> to vector<2x32xf32>
    %101 = vector.extract_strided_slice %98 {offsets = [0, 96], sizes = [2, 32], strides = [1, 1]} : vector<2x128xf32> to vector<2x32xf32>
    %102 = vector.extract_strided_slice %93 {offsets = [0, 64], sizes = [2, 32], strides = [1, 1]} : vector<2x128xf32> to vector<2x32xf32>
    %103 = math.tanh %102 : vector<2x32xf32>
    %104 = arith.mulf %100, %87 : vector<2x32xf32>
    %105 = arith.mulf %99, %103 : vector<2x32xf32>
    %106 = arith.addf %104, %105 : vector<2x32xf32>
    %107 = math.tanh %106 : vector<2x32xf32>
    %108 = arith.mulf %101, %107 : vector<2x32xf32>
    %c8 = arith.constant 8 : index
    %c0_30 = arith.constant 0 : index
    %109 = vector.load %arg14[%c8, %c0_30] : memref<16x32xf32, #tpu.memory_space<vmem>>, vector<2x32xf32>
    tpu.vector_store %arg14[%c8, %c0_30], %108 {strides = array<i32>} : memref<16x32xf32, #tpu.memory_space<vmem>>, vector<2x32xf32>,
    %110 = vector.extract_strided_slice %10 {offsets = [10, 0], sizes = [2, 128], strides = [1, 1]} : vector<16x128xf32> to vector<2x128xf32>
    %cst_31 = arith.constant dense<0.000000e+00> : vector<2x128xf32>
    %111 = tpu.matmul %108, %2, %cst_31 {dimension_numbers = #tpu.dot_dimension_numbers<[1], [0], [0], [1], [0, 0, 1, 1], [], []>} : vector<2x32xf32>, vector<32x128xf32>, vector<2x128xf32> -> vector<2x128xf32>
    %112 = arith.addf %110, %111 : vector<2x128xf32>
    %113 = arith.negf %112 : vector<2x128xf32>
    %114 = math.exp %113 : vector<2x128xf32>
    %cst_32 = arith.constant 1.000000e+00 : f32
    %115 = vector.broadcast %cst_32 : f32 to vector<2x128xf32>
    %116 = arith.addf %115, %114 : vector<2x128xf32>
    %117 = arith.divf %115, %116 : vector<2x128xf32>
    %118 = vector.extract_strided_slice %117 {offsets = [0, 0], sizes = [2, 32], strides = [1, 1]} : vector<2x128xf32> to vector<2x32xf32>
    %119 = vector.extract_strided_slice %117 {offsets = [0, 32], sizes = [2, 32], strides = [1, 1]} : vector<2x128xf32> to vector<2x32xf32>
    %120 = vector.extract_strided_slice %117 {offsets = [0, 96], sizes = [2, 32], strides = [1, 1]} : vector<2x128xf32> to vector<2x32xf32>
    %121 = vector.extract_strided_slice %112 {offsets = [0, 64], sizes = [2, 32], strides = [1, 1]} : vector<2x128xf32> to vector<2x32xf32>
    %122 = math.tanh %121 : vector<2x32xf32>
    %123 = arith.mulf %119, %106 : vector<2x32xf32>
    %124 = arith.mulf %118, %122 : vector<2x32xf32>
    %125 = arith.addf %123, %124 : vector<2x32xf32>
    %126 = math.tanh %125 : vector<2x32xf32>
    %127 = arith.mulf %120, %126 : vector<2x32xf32>
    %c10 = arith.constant 10 : index
    %c0_33 = arith.constant 0 : index
    %128 = vector.load %arg14[%c10, %c0_33] : memref<16x32xf32, #tpu.memory_space<vmem>>, vector<2x32xf32>
    tpu.vector_store %arg14[%c10, %c0_33], %127 {strides = array<i32>} : memref<16x32xf32, #tpu.memory_space<vmem>>, vector<2x32xf32>,
    %129 = vector.extract_strided_slice %10 {offsets = [12, 0], sizes = [2, 128], strides = [1, 1]} : vector<16x128xf32> to vector<2x128xf32>
    %cst_34 = arith.constant dense<0.000000e+00> : vector<2x128xf32>
    %130 = tpu.matmul %127, %2, %cst_34 {dimension_numbers = #tpu.dot_dimension_numbers<[1], [0], [0], [1], [0, 0, 1, 1], [], []>} : vector<2x32xf32>, vector<32x128xf32>, vector<2x128xf32> -> vector<2x128xf32>
    %131 = arith.addf %129, %130 : vector<2x128xf32>
    %132 = arith.negf %131 : vector<2x128xf32>
    %133 = math.exp %132 : vector<2x128xf32>
    %cst_35 = arith.constant 1.000000e+00 : f32
    %134 = vector.broadcast %cst_35 : f32 to vector<2x128xf32>
    %135 = arith.addf %134, %133 : vector<2x128xf32>
    %136 = arith.divf %134, %135 : vector<2x128xf32>
    %137 = vector.extract_strided_slice %136 {offsets = [0, 0], sizes = [2, 32], strides = [1, 1]} : vector<2x128xf32> to vector<2x32xf32>
    %138 = vector.extract_strided_slice %136 {offsets = [0, 32], sizes = [2, 32], strides = [1, 1]} : vector<2x128xf32> to vector<2x32xf32>
    %139 = vector.extract_strided_slice %136 {offsets = [0, 96], sizes = [2, 32], strides = [1, 1]} : vector<2x128xf32> to vector<2x32xf32>
    %140 = vector.extract_strided_slice %131 {offsets = [0, 64], sizes = [2, 32], strides = [1, 1]} : vector<2x128xf32> to vector<2x32xf32>
    %141 = math.tanh %140 : vector<2x32xf32>
    %142 = arith.mulf %138, %125 : vector<2x32xf32>
    %143 = arith.mulf %137, %141 : vector<2x32xf32>
    %144 = arith.addf %142, %143 : vector<2x32xf32>
    %145 = math.tanh %144 : vector<2x32xf32>
    %146 = arith.mulf %139, %145 : vector<2x32xf32>
    %c12 = arith.constant 12 : index
    %c0_36 = arith.constant 0 : index
    %147 = vector.load %arg14[%c12, %c0_36] : memref<16x32xf32, #tpu.memory_space<vmem>>, vector<2x32xf32>
    tpu.vector_store %arg14[%c12, %c0_36], %146 {strides = array<i32>} : memref<16x32xf32, #tpu.memory_space<vmem>>, vector<2x32xf32>,
    %148 = vector.extract_strided_slice %10 {offsets = [14, 0], sizes = [2, 128], strides = [1, 1]} : vector<16x128xf32> to vector<2x128xf32>
    %cst_37 = arith.constant dense<0.000000e+00> : vector<2x128xf32>
    %149 = tpu.matmul %146, %2, %cst_37 {dimension_numbers = #tpu.dot_dimension_numbers<[1], [0], [0], [1], [0, 0, 1, 1], [], []>} : vector<2x32xf32>, vector<32x128xf32>, vector<2x128xf32> -> vector<2x128xf32>
    %150 = arith.addf %148, %149 : vector<2x128xf32>
    %151 = arith.negf %150 : vector<2x128xf32>
    %152 = math.exp %151 : vector<2x128xf32>
    %cst_38 = arith.constant 1.000000e+00 : f32
    %153 = vector.broadcast %cst_38 : f32 to vector<2x128xf32>
    %154 = arith.addf %153, %152 : vector<2x128xf32>
    %155 = arith.divf %153, %154 : vector<2x128xf32>
    %156 = vector.extract_strided_slice %155 {offsets = [0, 0], sizes = [2, 32], strides = [1, 1]} : vector<2x128xf32> to vector<2x32xf32>
    %157 = vector.extract_strided_slice %155 {offsets = [0, 32], sizes = [2, 32], strides = [1, 1]} : vector<2x128xf32> to vector<2x32xf32>
    %158 = vector.extract_strided_slice %155 {offsets = [0, 96], sizes = [2, 32], strides = [1, 1]} : vector<2x128xf32> to vector<2x32xf32>
    %159 = vector.extract_strided_slice %150 {offsets = [0, 64], sizes = [2, 32], strides = [1, 1]} : vector<2x128xf32> to vector<2x32xf32>
    %160 = math.tanh %159 : vector<2x32xf32>
    %161 = arith.mulf %157, %144 : vector<2x32xf32>
    %162 = arith.mulf %156, %160 : vector<2x32xf32>
    %163 = arith.addf %161, %162 : vector<2x32xf32>
    %164 = math.tanh %163 : vector<2x32xf32>
    %165 = arith.mulf %158, %164 : vector<2x32xf32>
    %c14 = arith.constant 14 : index
    %c0_39 = arith.constant 0 : index
    %166 = vector.load %arg14[%c14, %c0_39] : memref<16x32xf32, #tpu.memory_space<vmem>>, vector<2x32xf32>
    tpu.vector_store %arg14[%c14, %c0_39], %165 {strides = array<i32>} : memref<16x32xf32, #tpu.memory_space<vmem>>, vector<2x32xf32>,
    %c0_40 = arith.constant 0 : index
    %c0_41 = arith.constant 0 : index
    %c0_42 = arith.constant 0 : index
    %167 = vector.load %arg12[%c0_40, %c0_41, %c0_42] : memref<2x2x32xf32, #tpu.memory_space<vmem>>, vector<1x2x32xf32>
    %168 = vector.shape_cast %167 : vector<1x2x32xf32> to vector<2x32xf32>
    %169 = vector.shape_cast %165 : vector<2x32xf32> to vector<1x2x32xf32>
    tpu.vector_store %arg12[%c0_40, %c0_41, %c0_42], %169 {strides = array<i32>} : memref<2x2x32xf32, #tpu.memory_space<vmem>>, vector<1x2x32xf32>,
    %c0_43 = arith.constant 0 : index
    %c0_44 = arith.constant 0 : index
    %c0_45 = arith.constant 0 : index
    %170 = vector.load %arg13[%c0_43, %c0_44, %c0_45] : memref<2x2x32xf32, #tpu.memory_space<vmem>>, vector<1x2x32xf32>
    %171 = vector.shape_cast %170 : vector<1x2x32xf32> to vector<2x32xf32>
    %172 = vector.shape_cast %163 : vector<2x32xf32> to vector<1x2x32xf32>
    tpu.vector_store %arg13[%c0_43, %c0_44, %c0_45], %172 {strides = array<i32>} : memref<2x2x32xf32, #tpu.memory_space<vmem>>, vector<1x2x32xf32>,
    %c0_46 = arith.constant 0 : index
    %c0_47 = arith.constant 0 : index
    %173 = vector.load %arg5[%c0_46, %c0_47] : memref<32x128xf32, #tpu.memory_space<vmem>>, vector<32x128xf32>
    %c0_48 = arith.constant 0 : index
    %c0_49 = arith.constant 0 : index
    %174 = vector.load %arg6[%c0_48, %c0_49] : memref<1x128xf32, #tpu.memory_space<vmem>>, vector<1x128xf32>
    %c0_50 = arith.constant 0 : index
    %c0_51 = arith.constant 0 : index
    %175 = vector.load %arg14[%c0_50, %c0_51] : memref<16x32xf32, #tpu.memory_space<vmem>>, vector<16x32xf32>
    %c0_52 = arith.constant 0 : index
    %c0_53 = arith.constant 0 : index
    %176 = vector.load %arg4[%c0_52, %c0_53] : memref<32x128xf32, #tpu.memory_space<vmem>>, vector<32x128xf32>
    %cst_54 = arith.constant dense<0.000000e+00> : vector<16x128xf32>
    %177 = tpu.matmul %175, %176, %cst_54 {dimension_numbers = #tpu.dot_dimension_numbers<[1], [0], [0], [1], [0, 0, 1, 1], [], []>} : vector<16x32xf32>, vector<32x128xf32>, vector<16x128xf32> -> vector<16x128xf32>
    %178 = vector.broadcast %174 : vector<1x128xf32> to vector<16x128xf32>
    %179 = arith.addf %177, %178 : vector<16x128xf32>
    %c1 = arith.constant 1 : index
    %c0_55 = arith.constant 0 : index
    %c0_56 = arith.constant 0 : index
    %180 = vector.load %arg9[%c1, %c0_55, %c0_56] : memref<2x2x32xf32, #tpu.memory_space<vmem>>, vector<1x2x32xf32>
    %181 = vector.shape_cast %180 : vector<1x2x32xf32> to vector<2x32xf32>
    %c1_57 = arith.constant 1 : index
    %c0_58 = arith.constant 0 : index
    %c0_59 = arith.constant 0 : index
    %182 = vector.load %arg10[%c1_57, %c0_58, %c0_59] : memref<2x2x32xf32, #tpu.memory_space<vmem>>, vector<1x2x32xf32>
    %183 = vector.shape_cast %182 : vector<1x2x32xf32> to vector<2x32xf32>
    %184 = vector.extract_strided_slice %179 {offsets = [0, 0], sizes = [2, 128], strides = [1, 1]} : vector<16x128xf32> to vector<2x128xf32>
    %cst_60 = arith.constant dense<0.000000e+00> : vector<2x128xf32>
    %185 = tpu.matmul %181, %173, %cst_60 {dimension_numbers = #tpu.dot_dimension_numbers<[1], [0], [0], [1], [0, 0, 1, 1], [], []>} : vector<2x32xf32>, vector<32x128xf32>, vector<2x128xf32> -> vector<2x128xf32>
    %186 = arith.addf %184, %185 : vector<2x128xf32>
    %187 = arith.negf %186 : vector<2x128xf32>
    %188 = math.exp %187 : vector<2x128xf32>
    %cst_61 = arith.constant 1.000000e+00 : f32
    %189 = vector.broadcast %cst_61 : f32 to vector<2x128xf32>
    %190 = arith.addf %189, %188 : vector<2x128xf32>
    %191 = arith.divf %189, %190 : vector<2x128xf32>
    %192 = vector.extract_strided_slice %191 {offsets = [0, 0], sizes = [2, 32], strides = [1, 1]} : vector<2x128xf32> to vector<2x32xf32>
    %193 = vector.extract_strided_slice %191 {offsets = [0, 32], sizes = [2, 32], strides = [1, 1]} : vector<2x128xf32> to vector<2x32xf32>
    %194 = vector.extract_strided_slice %191 {offsets = [0, 96], sizes = [2, 32], strides = [1, 1]} : vector<2x128xf32> to vector<2x32xf32>
    %195 = vector.extract_strided_slice %186 {offsets = [0, 64], sizes = [2, 32], strides = [1, 1]} : vector<2x128xf32> to vector<2x32xf32>
    %196 = math.tanh %195 : vector<2x32xf32>
    %197 = arith.mulf %193, %183 : vector<2x32xf32>
    %198 = arith.mulf %192, %196 : vector<2x32xf32>
    %199 = arith.addf %197, %198 : vector<2x32xf32>
    %200 = math.tanh %199 : vector<2x32xf32>
    %201 = arith.mulf %194, %200 : vector<2x32xf32>
    %202 = vector.extract_strided_slice %0 {offsets = [0, 0], sizes = [1, 32], strides = [1, 1]} : vector<8x32xf32> to vector<1x32xf32>
    %203 = vector.broadcast %202 : vector<1x32xf32> to vector<2x32xf32>
    %204 = arith.mulf %201, %203 : vector<2x32xf32>
    %205 = arith.addf %1, %204 : vector<2x32xf32>
    %206 = vector.extract_strided_slice %179 {offsets = [2, 0], sizes = [2, 128], strides = [1, 1]} : vector<16x128xf32> to vector<2x128xf32>
    %cst_62 = arith.constant dense<0.000000e+00> : vector<2x128xf32>
    %207 = tpu.matmul %201, %173, %cst_62 {dimension_numbers = #tpu.dot_dimension_numbers<[1], [0], [0], [1], [0, 0, 1, 1], [], []>} : vector<2x32xf32>, vector<32x128xf32>, vector<2x128xf32> -> vector<2x128xf32>
    %208 = arith.addf %206, %207 : vector<2x128xf32>
    %209 = arith.negf %208 : vector<2x128xf32>
    %210 = math.exp %209 : vector<2x128xf32>
    %cst_63 = arith.constant 1.000000e+00 : f32
    %211 = vector.broadcast %cst_63 : f32 to vector<2x128xf32>
    %212 = arith.addf %211, %210 : vector<2x128xf32>
    %213 = arith.divf %211, %212 : vector<2x128xf32>
    %214 = vector.extract_strided_slice %213 {offsets = [0, 0], sizes = [2, 32], strides = [1, 1]} : vector<2x128xf32> to vector<2x32xf32>
    %215 = vector.extract_strided_slice %213 {offsets = [0, 32], sizes = [2, 32], strides = [1, 1]} : vector<2x128xf32> to vector<2x32xf32>
    %216 = vector.extract_strided_slice %213 {offsets = [0, 96], sizes = [2, 32], strides = [1, 1]} : vector<2x128xf32> to vector<2x32xf32>
    %217 = vector.extract_strided_slice %208 {offsets = [0, 64], sizes = [2, 32], strides = [1, 1]} : vector<2x128xf32> to vector<2x32xf32>
    %218 = math.tanh %217 : vector<2x32xf32>
    %219 = arith.mulf %215, %199 : vector<2x32xf32>
    %220 = arith.mulf %214, %218 : vector<2x32xf32>
    %221 = arith.addf %219, %220 : vector<2x32xf32>
    %222 = math.tanh %221 : vector<2x32xf32>
    %223 = arith.mulf %216, %222 : vector<2x32xf32>
    %224 = vector.extract_strided_slice %0 {offsets = [1, 0], sizes = [1, 32], strides = [1, 1]} : vector<8x32xf32> to vector<1x32xf32>
    %225 = vector.broadcast %224 : vector<1x32xf32> to vector<2x32xf32>
    %226 = arith.mulf %223, %225 : vector<2x32xf32>
    %227 = arith.addf %205, %226 : vector<2x32xf32>
    %228 = vector.extract_strided_slice %179 {offsets = [4, 0], sizes = [2, 128], strides = [1, 1]} : vector<16x128xf32> to vector<2x128xf32>
    %cst_64 = arith.constant dense<0.000000e+00> : vector<2x128xf32>
    %229 = tpu.matmul %223, %173, %cst_64 {dimension_numbers = #tpu.dot_dimension_numbers<[1], [0], [0], [1], [0, 0, 1, 1], [], []>} : vector<2x32xf32>, vector<32x128xf32>, vector<2x128xf32> -> vector<2x128xf32>
    %230 = arith.addf %228, %229 : vector<2x128xf32>
    %231 = arith.negf %230 : vector<2x128xf32>
    %232 = math.exp %231 : vector<2x128xf32>
    %cst_65 = arith.constant 1.000000e+00 : f32
    %233 = vector.broadcast %cst_65 : f32 to vector<2x128xf32>
    %234 = arith.addf %233, %232 : vector<2x128xf32>
    %235 = arith.divf %233, %234 : vector<2x128xf32>
    %236 = vector.extract_strided_slice %235 {offsets = [0, 0], sizes = [2, 32], strides = [1, 1]} : vector<2x128xf32> to vector<2x32xf32>
    %237 = vector.extract_strided_slice %235 {offsets = [0, 32], sizes = [2, 32], strides = [1, 1]} : vector<2x128xf32> to vector<2x32xf32>
    %238 = vector.extract_strided_slice %235 {offsets = [0, 96], sizes = [2, 32], strides = [1, 1]} : vector<2x128xf32> to vector<2x32xf32>
    %239 = vector.extract_strided_slice %230 {offsets = [0, 64], sizes = [2, 32], strides = [1, 1]} : vector<2x128xf32> to vector<2x32xf32>
    %240 = math.tanh %239 : vector<2x32xf32>
    %241 = arith.mulf %237, %221 : vector<2x32xf32>
    %242 = arith.mulf %236, %240 : vector<2x32xf32>
    %243 = arith.addf %241, %242 : vector<2x32xf32>
    %244 = math.tanh %243 : vector<2x32xf32>
    %245 = arith.mulf %238, %244 : vector<2x32xf32>
    %246 = vector.extract_strided_slice %0 {offsets = [2, 0], sizes = [1, 32], strides = [1, 1]} : vector<8x32xf32> to vector<1x32xf32>
    %247 = vector.broadcast %246 : vector<1x32xf32> to vector<2x32xf32>
    %248 = arith.mulf %245, %247 : vector<2x32xf32>
    %249 = arith.addf %227, %248 : vector<2x32xf32>
    %250 = vector.extract_strided_slice %179 {offsets = [6, 0], sizes = [2, 128], strides = [1, 1]} : vector<16x128xf32> to vector<2x128xf32>
    %cst_66 = arith.constant dense<0.000000e+00> : vector<2x128xf32>
    %251 = tpu.matmul %245, %173, %cst_66 {dimension_numbers = #tpu.dot_dimension_numbers<[1], [0], [0], [1], [0, 0, 1, 1], [], []>} : vector<2x32xf32>, vector<32x128xf32>, vector<2x128xf32> -> vector<2x128xf32>
    %252 = arith.addf %250, %251 : vector<2x128xf32>
    %253 = arith.negf %252 : vector<2x128xf32>
    %254 = math.exp %253 : vector<2x128xf32>
    %cst_67 = arith.constant 1.000000e+00 : f32
    %255 = vector.broadcast %cst_67 : f32 to vector<2x128xf32>
    %256 = arith.addf %255, %254 : vector<2x128xf32>
    %257 = arith.divf %255, %256 : vector<2x128xf32>
    %258 = vector.extract_strided_slice %257 {offsets = [0, 0], sizes = [2, 32], strides = [1, 1]} : vector<2x128xf32> to vector<2x32xf32>
    %259 = vector.extract_strided_slice %257 {offsets = [0, 32], sizes = [2, 32], strides = [1, 1]} : vector<2x128xf32> to vector<2x32xf32>
    %260 = vector.extract_strided_slice %257 {offsets = [0, 96], sizes = [2, 32], strides = [1, 1]} : vector<2x128xf32> to vector<2x32xf32>
    %261 = vector.extract_strided_slice %252 {offsets = [0, 64], sizes = [2, 32], strides = [1, 1]} : vector<2x128xf32> to vector<2x32xf32>
    %262 = math.tanh %261 : vector<2x32xf32>
    %263 = arith.mulf %259, %243 : vector<2x32xf32>
    %264 = arith.mulf %258, %262 : vector<2x32xf32>
    %265 = arith.addf %263, %264 : vector<2x32xf32>
    %266 = math.tanh %265 : vector<2x32xf32>
    %267 = arith.mulf %260, %266 : vector<2x32xf32>
    %268 = vector.extract_strided_slice %0 {offsets = [3, 0], sizes = [1, 32], strides = [1, 1]} : vector<8x32xf32> to vector<1x32xf32>
    %269 = vector.broadcast %268 : vector<1x32xf32> to vector<2x32xf32>
    %270 = arith.mulf %267, %269 : vector<2x32xf32>
    %271 = arith.addf %249, %270 : vector<2x32xf32>
    %272 = vector.extract_strided_slice %179 {offsets = [8, 0], sizes = [2, 128], strides = [1, 1]} : vector<16x128xf32> to vector<2x128xf32>
    %cst_68 = arith.constant dense<0.000000e+00> : vector<2x128xf32>
    %273 = tpu.matmul %267, %173, %cst_68 {dimension_numbers = #tpu.dot_dimension_numbers<[1], [0], [0], [1], [0, 0, 1, 1], [], []>} : vector<2x32xf32>, vector<32x128xf32>, vector<2x128xf32> -> vector<2x128xf32>
    %274 = arith.addf %272, %273 : vector<2x128xf32>
    %275 = arith.negf %274 : vector<2x128xf32>
    %276 = math.exp %275 : vector<2x128xf32>
    %cst_69 = arith.constant 1.000000e+00 : f32
    %277 = vector.broadcast %cst_69 : f32 to vector<2x128xf32>
    %278 = arith.addf %277, %276 : vector<2x128xf32>
    %279 = arith.divf %277, %278 : vector<2x128xf32>
    %280 = vector.extract_strided_slice %279 {offsets = [0, 0], sizes = [2, 32], strides = [1, 1]} : vector<2x128xf32> to vector<2x32xf32>
    %281 = vector.extract_strided_slice %279 {offsets = [0, 32], sizes = [2, 32], strides = [1, 1]} : vector<2x128xf32> to vector<2x32xf32>
    %282 = vector.extract_strided_slice %279 {offsets = [0, 96], sizes = [2, 32], strides = [1, 1]} : vector<2x128xf32> to vector<2x32xf32>
    %283 = vector.extract_strided_slice %274 {offsets = [0, 64], sizes = [2, 32], strides = [1, 1]} : vector<2x128xf32> to vector<2x32xf32>
    %284 = math.tanh %283 : vector<2x32xf32>
    %285 = arith.mulf %281, %265 : vector<2x32xf32>
    %286 = arith.mulf %280, %284 : vector<2x32xf32>
    %287 = arith.addf %285, %286 : vector<2x32xf32>
    %288 = math.tanh %287 : vector<2x32xf32>
    %289 = arith.mulf %282, %288 : vector<2x32xf32>
    %290 = vector.extract_strided_slice %0 {offsets = [4, 0], sizes = [1, 32], strides = [1, 1]} : vector<8x32xf32> to vector<1x32xf32>
    %291 = vector.broadcast %290 : vector<1x32xf32> to vector<2x32xf32>
    %292 = arith.mulf %289, %291 : vector<2x32xf32>
    %293 = arith.addf %271, %292 : vector<2x32xf32>
    %294 = vector.extract_strided_slice %179 {offsets = [10, 0], sizes = [2, 128], strides = [1, 1]} : vector<16x128xf32> to vector<2x128xf32>
    %cst_70 = arith.constant dense<0.000000e+00> : vector<2x128xf32>
    %295 = tpu.matmul %289, %173, %cst_70 {dimension_numbers = #tpu.dot_dimension_numbers<[1], [0], [0], [1], [0, 0, 1, 1], [], []>} : vector<2x32xf32>, vector<32x128xf32>, vector<2x128xf32> -> vector<2x128xf32>
    %296 = arith.addf %294, %295 : vector<2x128xf32>
    %297 = arith.negf %296 : vector<2x128xf32>
    %298 = math.exp %297 : vector<2x128xf32>
    %cst_71 = arith.constant 1.000000e+00 : f32
    %299 = vector.broadcast %cst_71 : f32 to vector<2x128xf32>
    %300 = arith.addf %299, %298 : vector<2x128xf32>
    %301 = arith.divf %299, %300 : vector<2x128xf32>
    %302 = vector.extract_strided_slice %301 {offsets = [0, 0], sizes = [2, 32], strides = [1, 1]} : vector<2x128xf32> to vector<2x32xf32>
    %303 = vector.extract_strided_slice %301 {offsets = [0, 32], sizes = [2, 32], strides = [1, 1]} : vector<2x128xf32> to vector<2x32xf32>
    %304 = vector.extract_strided_slice %301 {offsets = [0, 96], sizes = [2, 32], strides = [1, 1]} : vector<2x128xf32> to vector<2x32xf32>
    %305 = vector.extract_strided_slice %296 {offsets = [0, 64], sizes = [2, 32], strides = [1, 1]} : vector<2x128xf32> to vector<2x32xf32>
    %306 = math.tanh %305 : vector<2x32xf32>
    %307 = arith.mulf %303, %287 : vector<2x32xf32>
    %308 = arith.mulf %302, %306 : vector<2x32xf32>
    %309 = arith.addf %307, %308 : vector<2x32xf32>
    %310 = math.tanh %309 : vector<2x32xf32>
    %311 = arith.mulf %304, %310 : vector<2x32xf32>
    %312 = vector.extract_strided_slice %0 {offsets = [5, 0], sizes = [1, 32], strides = [1, 1]} : vector<8x32xf32> to vector<1x32xf32>
    %313 = vector.broadcast %312 : vector<1x32xf32> to vector<2x32xf32>
    %314 = arith.mulf %311, %313 : vector<2x32xf32>
    %315 = arith.addf %293, %314 : vector<2x32xf32>
    %316 = vector.extract_strided_slice %179 {offsets = [12, 0], sizes = [2, 128], strides = [1, 1]} : vector<16x128xf32> to vector<2x128xf32>
    %cst_72 = arith.constant dense<0.000000e+00> : vector<2x128xf32>
    %317 = tpu.matmul %311, %173, %cst_72 {dimension_numbers = #tpu.dot_dimension_numbers<[1], [0], [0], [1], [0, 0, 1, 1], [], []>} : vector<2x32xf32>, vector<32x128xf32>, vector<2x128xf32> -> vector<2x128xf32>
    %318 = arith.addf %316, %317 : vector<2x128xf32>
    %319 = arith.negf %318 : vector<2x128xf32>
    %320 = math.exp %319 : vector<2x128xf32>
    %cst_73 = arith.constant 1.000000e+00 : f32
    %321 = vector.broadcast %cst_73 : f32 to vector<2x128xf32>
    %322 = arith.addf %321, %320 : vector<2x128xf32>
    %323 = arith.divf %321, %322 : vector<2x128xf32>
    %324 = vector.extract_strided_slice %323 {offsets = [0, 0], sizes = [2, 32], strides = [1, 1]} : vector<2x128xf32> to vector<2x32xf32>
    %325 = vector.extract_strided_slice %323 {offsets = [0, 32], sizes = [2, 32], strides = [1, 1]} : vector<2x128xf32> to vector<2x32xf32>
    %326 = vector.extract_strided_slice %323 {offsets = [0, 96], sizes = [2, 32], strides = [1, 1]} : vector<2x128xf32> to vector<2x32xf32>
    %327 = vector.extract_strided_slice %318 {offsets = [0, 64], sizes = [2, 32], strides = [1, 1]} : vector<2x128xf32> to vector<2x32xf32>
    %328 = math.tanh %327 : vector<2x32xf32>
    %329 = arith.mulf %325, %309 : vector<2x32xf32>
    %330 = arith.mulf %324, %328 : vector<2x32xf32>
    %331 = arith.addf %329, %330 : vector<2x32xf32>
    %332 = math.tanh %331 : vector<2x32xf32>
    %333 = arith.mulf %326, %332 : vector<2x32xf32>
    %334 = vector.extract_strided_slice %0 {offsets = [6, 0], sizes = [1, 32], strides = [1, 1]} : vector<8x32xf32> to vector<1x32xf32>
    %335 = vector.broadcast %334 : vector<1x32xf32> to vector<2x32xf32>
    %336 = arith.mulf %333, %335 : vector<2x32xf32>
    %337 = arith.addf %315, %336 : vector<2x32xf32>
    %338 = vector.extract_strided_slice %179 {offsets = [14, 0], sizes = [2, 128], strides = [1, 1]} : vector<16x128xf32> to vector<2x128xf32>
    %cst_74 = arith.constant dense<0.000000e+00> : vector<2x128xf32>
    %339 = tpu.matmul %333, %173, %cst_74 {dimension_numbers = #tpu.dot_dimension_numbers<[1], [0], [0], [1], [0, 0, 1, 1], [], []>} : vector<2x32xf32>, vector<32x128xf32>, vector<2x128xf32> -> vector<2x128xf32>
    %340 = arith.addf %338, %339 : vector<2x128xf32>
    %341 = arith.negf %340 : vector<2x128xf32>
    %342 = math.exp %341 : vector<2x128xf32>
    %cst_75 = arith.constant 1.000000e+00 : f32
    %343 = vector.broadcast %cst_75 : f32 to vector<2x128xf32>
    %344 = arith.addf %343, %342 : vector<2x128xf32>
    %345 = arith.divf %343, %344 : vector<2x128xf32>
    %346 = vector.extract_strided_slice %345 {offsets = [0, 0], sizes = [2, 32], strides = [1, 1]} : vector<2x128xf32> to vector<2x32xf32>
    %347 = vector.extract_strided_slice %345 {offsets = [0, 32], sizes = [2, 32], strides = [1, 1]} : vector<2x128xf32> to vector<2x32xf32>
    %348 = vector.extract_strided_slice %345 {offsets = [0, 96], sizes = [2, 32], strides = [1, 1]} : vector<2x128xf32> to vector<2x32xf32>
    %349 = vector.extract_strided_slice %340 {offsets = [0, 64], sizes = [2, 32], strides = [1, 1]} : vector<2x128xf32> to vector<2x32xf32>
    %350 = math.tanh %349 : vector<2x32xf32>
    %351 = arith.mulf %347, %331 : vector<2x32xf32>
    %352 = arith.mulf %346, %350 : vector<2x32xf32>
    %353 = arith.addf %351, %352 : vector<2x32xf32>
    %354 = math.tanh %353 : vector<2x32xf32>
    %355 = arith.mulf %348, %354 : vector<2x32xf32>
    %356 = vector.extract_strided_slice %0 {offsets = [7, 0], sizes = [1, 32], strides = [1, 1]} : vector<8x32xf32> to vector<1x32xf32>
    %357 = vector.broadcast %356 : vector<1x32xf32> to vector<2x32xf32>
    %358 = arith.mulf %355, %357 : vector<2x32xf32>
    %359 = arith.addf %337, %358 : vector<2x32xf32>
    %c1_76 = arith.constant 1 : index
    %c0_77 = arith.constant 0 : index
    %c0_78 = arith.constant 0 : index
    %360 = vector.load %arg12[%c1_76, %c0_77, %c0_78] : memref<2x2x32xf32, #tpu.memory_space<vmem>>, vector<1x2x32xf32>
    %361 = vector.shape_cast %360 : vector<1x2x32xf32> to vector<2x32xf32>
    %362 = vector.shape_cast %355 : vector<2x32xf32> to vector<1x2x32xf32>
    tpu.vector_store %arg12[%c1_76, %c0_77, %c0_78], %362 {strides = array<i32>} : memref<2x2x32xf32, #tpu.memory_space<vmem>>, vector<1x2x32xf32>,
    %c1_79 = arith.constant 1 : index
    %c0_80 = arith.constant 0 : index
    %c0_81 = arith.constant 0 : index
    %363 = vector.load %arg13[%c1_79, %c0_80, %c0_81] : memref<2x2x32xf32, #tpu.memory_space<vmem>>, vector<1x2x32xf32>
    %364 = vector.shape_cast %363 : vector<1x2x32xf32> to vector<2x32xf32>
    %365 = vector.shape_cast %353 : vector<2x32xf32> to vector<1x2x32xf32>
    tpu.vector_store %arg13[%c1_79, %c0_80, %c0_81], %365 {strides = array<i32>} : memref<2x2x32xf32, #tpu.memory_space<vmem>>, vector<1x2x32xf32>,
    %cst_82 = arith.constant dense<0.000000e+00> : vector<2xf32>
    %366 = vector.multi_reduction <add>, %359, %cst_82 [1] : vector<2x32xf32> to vector<2xf32>
    %367 = vector.shape_cast %366 : vector<2xf32> to vector<2x1xf32>
    %c0_83 = arith.constant 0 : index
    %c0_84 = arith.constant 0 : index
    %368 = vector.load %arg8[%c0_83, %c0_84] : memref<1x1xf32, #tpu.memory_space<vmem>>, vector<1x1xf32>
    %369 = vector.broadcast %368 : vector<1x1xf32> to vector<2x1xf32>
    %370 = arith.addf %367, %369 : vector<2x1xf32>
    %c0_85 = arith.constant 0 : index
    %c0_86 = arith.constant 0 : index
    %371 = vector.load %arg11[%c0_85, %c0_86] : memref<2x1xf32, #tpu.memory_space<vmem>>, vector<2x1xf32>
    tpu.vector_store %arg11[%c0_85, %c0_86], %370 {strides = array<i32>} : memref<2x1xf32, #tpu.memory_space<vmem>>, vector<2x1xf32>,
    return
  }
}

</mosaic_0001>

<bundles_post_ra>
// kernel: forward.1
= control target key start
LH: loop header
LB: loop body
LE: loop exit
PB: predicated region body
PF: predicated region fallthrough
CT: control target
= control target key end

     0   :  { %s3168_s0 = inlined_call_operand.vmem [shape: f32[16,1], index: 0, kind: input, shape index: {}]   ;;  %s3169_s1 = inlined_call_operand.vmem [shape: f32[1,128], index: 1, kind: input, shape index: {}]   ;;  %s3170_s2 = inlined_call_operand.vmem [shape: f32[32,128], index: 2, kind: input, shape index: {}]   ;;  %s3171_s3 = inlined_call_operand.vmem [shape: f32[1,128], index: 3, kind: input, shape index: {}]   ;;  %s3172_s4 = inlined_call_operand.hbm [shape: f32[32,128], index: 4, kind: input, shape index: {}]   ;;  %s3173_s5 = inlined_call_operand.hbm [shape: f32[32,128], index: 5, kind: input, shape index: {}]   ;;  %s3174_s6 = inlined_call_operand.vmem [shape: f32[1,128], index: 6, kind: input, shape index: {}]   ;;  %s3175_s7 = inlined_call_operand.vmem [shape: f32[8,32], index: 7, kind: input, shape index: {}]   ;;  %s3176_s8 = inlined_call_operand.<no memory space> [shape: f32[1,1], index: 8, kind: input, shape index: {}]   ;;  %s3177_s9 = inlined_call_operand.vmem [shape: f32[2,2,32], index: 9, kind: input, shape index: {}, may-alias: {9,10}]   ;;  %s3178_s10 = inlined_call_operand.vmem [shape: f32[2,2,32], index: 10, kind: input, shape index: {}, may-alias: {9,10}]   ;;  %s3179_s11 = inlined_call_operand.vmem [shape: f32[2,1], index: 11, kind: output, shape index: {0}]   ;;  %s3180_s12 = inlined_call_operand.hbm [shape: f32[2,2,32], index: 12, kind: output, shape index: {1}]   ;;  %s3181_s13 = inlined_call_operand.hbm [shape: f32[2,2,32], index: 13, kind: output, shape index: {2}]  }
   0x1   :  { %v19_v0 = vstv %s3176_s8 }
   0x2   :  { %20 = vst [vmem:[#allocation3] sm:$0x1] %v19_v0 }
   0x3   :  { %21 = vsyncpa [#allocation5], 0 }
   0x4   :  { %22 = vsyncpa [#allocation8], 0 }
   0x5   :  { %23 = vsyncpa [#allocation6], 0 }
   0x6   :  { %24 = vsyncpa [#allocation11], 0  ;;  %s2652_s27 = smov [#allocation4]  }
   0x7   :  { %s38_s28 = sshll.u32 %s2652_s27, 4  ;;  %s39_s28 = int_to_ptr.vmem [resolvable:$true] %s38_s28 }
   0x8   :  { %s2572_s29 = scalar_lea.vmem %s39_s28, 512  ;;  %p2577_p1 = scmp.lt.s32.totalorder %s39_s28, %s39_s28 }
   0x9   :  { %p2573_p0 = scmp.ne.s32.totalorder %s39_s28, %s2572_s29  ;;  %p2578_p2 = scmp.lt.s32.totalorder %s2572_s29, %s2572_s29 }
   0xb   :  { %p2579_p3 = por %p2578_p2, %p2577_p1 }
   0xd   :  { %p2580_p4 = pnand %p2579_p3, %p2573_p0 }
   0xf   :  { %2583 = shalt.err (!%p2580_p4)
}
  0x10   :  { %s2653_s30 = smov 128   ;;  %s2654_s14 = smov 8  }
  0x11   :  { %44 = dma.hbm_to_vmem [thread:$0]  %s3172_s4, 512, %s39_s28, [#allocation5], %s2653_s30, %s2653_s30, %s2654_s14  }
  0x12   :  { %s2655_s8 = smov [#allocation7]  }
  0x13   :  { %s50_s17 = sshll.u32 %s2655_s8, 4  ;;  %s51_s17 = int_to_ptr.vmem [resolvable:$true] %s50_s17 }
  0x14   :  { %s2592_s18 = scalar_lea.vmem %s51_s17, 512  ;;  %p2597_p6 = scmp.lt.s32.totalorder %s51_s17, %s51_s17 }
  0x15   :  { %p2593_p5 = scmp.ne.s32.totalorder %s51_s17, %s2592_s18  ;;  %p2598_p7 = scmp.lt.s32.totalorder %s2592_s18, %s2592_s18 }
  0x17   :  { %p2599_p8 = por %p2598_p7, %p2597_p6 }
  0x19   :  { %p2600_p9 = pnand %p2599_p8, %p2593_p5 }
  0x1b   :  { %2603 = shalt.err (!%p2600_p9)
}
  0x1c   :  { %56 = dma.hbm_to_vmem [thread:$0]  %s3173_s5, 512, %s51_s17, [#allocation8], %s2653_s30, %s2653_s30, %s2654_s14  }
  0x1d   :  { %2644 = dma.done.wait [#allocation5], 512  }
  0x1e   :  { %2645 = vsyncadd [#allocation5], 4294966784 }
  0x1f   :  { %2646 = dma.done.wait [#allocation8], 512  }
  0x20   :  { %2647 = vsyncadd [#allocation8], 4294966784  ;;  %v2656_v1 = vmov 0.0   ;;  %vm2657_vm0 = vmmov 0   ;;  %v2658_v2 = vmov 0   ;;  %v2753_v3 = vld [vmem:[%s3170_s2 + $0x18] sm:$0xff] }
  0x21   :  { %2235 = vmatprep.subr.mxu0 %v2656_v1  ;;  %2243 = vmatprep.mubr.msk.f32.mxu0 %vm2657_vm0, %v2656_v1  ;;  %v2758_v4 = vld [vmem:[%s3170_s2 + $0x10] sm:$0xff]  ;;  %v79_v5 = vld [vmem:[%s3168_s0] sm:$0xff]  ;;  %v2769_v6 = vld [vmem:[%s3170_s2 + $0x8] sm:$0xff]  ;;  %s2659_s29 = smov 32   ;;  %vm110_vm1 = vcmask 261120   ;;  %s2660_s19 = smov 64  }
  0x22   :  { %2435 = vset.pattern.permute.xlu0 %v2658_v2  ;;  %2246 = vmatprep.subr.mxu1 %v2656_v1  ;;  %v109_v7 = vld [vmem:[%s3178_s10] sm:$0x3]  ;;  %vm217_vm2 = vcmask 254976   ;;  %vm326_vm3 = vcmask 257026   ;;  %vm550_vm4 = vcmask 261126   ;;  %vm438_vm5 = vcmask 259076  }
  0x23   :  { %2254 = vmatprep.mubr.msk.f32.mxu1 %vm2657_vm0, %v2656_v1  ;;  %2236 = vmatpush3.msra.mxu0 %v2753_v3  ;;  %v2780_v8 = vld [vmem:[%s3170_s2] sm:$0xff]  ;;  %s2661_s22 = smov 96   ;;  %s2663_s24 = smov [#allocation10]  }
  0x24   :  { %2247 = vmatpush3.msra.mxu1 %v2753_v3  ;;  %2237 = vmatprep.subr.mxu0 %v2656_v1  ;;  %v108_v9 = vld [vmem:[%s3177_s9] sm:$0x3]  ;;  %s2090_s25 = sshll.u32 %s2663_s24, 4  ;;  %s2091_s25 = int_to_ptr.vmem [resolvable:$true] %s2090_s25 }
  0x25   :  { %84 = vperm.xlu0 %2435, %v79_v5   ;;  %2238 = vmatpush3.msra.mxu0 %v2758_v4  ;;  %v2810_v10 = vld [vmem:[%s3169_s1] ss:$0 sm:$0xff] }
  0x26   :  { %193 = vrot.lane.b32.xlu1 %v109_v7, %s2659_s29  ;;  %2239 = vmatprep.subr.mxu0 %v2656_v1  ;;  %v2816_v13 = vld [vmem:[%s3171_s3] ss:$0 sm:$0xff] }
  0x27   :  { %2248 = vmatprep.subr.mxu1 %v2656_v1  ;;  %2240 = vmatpush3.msra.mxu0 %v2769_v6 }
  0x28   :  { %2249 = vmatpush3.msra.mxu1 %v2758_v4  ;;  %2241 = vmatprep.subr.mxu0 %v2656_v1 }
  0x29   :  { %2250 = vmatprep.subr.mxu1 %v2656_v1  ;;  %2242 = vmatpush3.msra.mxu0 %v2780_v8 }
  0x2a   :  { %2251 = vmatpush3.msra.mxu1 %v2769_v6  ;;  %2244 = vmatmul.mubr.msk.f32.vlgmr.msra.gmra.mxu0 %vm110_vm1, %v108_v9 }
  0x2b   :  { %2252 = vmatprep.subr.mxu1 %v2656_v1  ;;  %2257 = vmatprep.subr.mxu0 %v2656_v1 }
  0x2c   :  { %2253 = vmatpush3.msra.mxu1 %v2780_v8  ;;  %2258 = vmatpush3.msra.mxu0 %v2753_v3 }
  0x2d   :  { %2265 = vmatprep.mubr.msk.f32.mxu0 %vm2657_vm0, %v2656_v1  ;;  %2259 = vmatprep.subr.mxu0 %v2656_v1 }
  0x2e   :  { %2268 = vmatprep.subr.mxu1 %v2656_v1  ;;  %2260 = vmatpush3.msra.mxu0 %v2758_v4 }
  0x2f   :  { %2261 = vmatprep.subr.mxu0 %v2656_v1 }
  0x30   :  { %2262 = vmatpush3.msra.mxu0 %v2769_v6 }
  0x31   :  { %2263 = vmatprep.subr.mxu0 %v2656_v1 }
  0x32   :  { %2264 = vmatpush3.msra.mxu0 %v2780_v8 }
  0x33   :  { %2279 = vmatprep.subr.mxu0 %v2656_v1 }
  0x98   :  { %v194_v25 = vpop.permute.xlu1 %193 }
  0xa0   :  { %v85_v11 = vpop.permute.xlu0 %84 }
  0xa1   :  { %v98_v12 = vmul.f32 %v2810_v10, %v85_v11 }
  0xa3   :  { %v2819_v14 = vadd.f32 %v2816_v13, %v98_v12 }
  0xea   :  { %v180_v15 = vpop.f32.mrf.mxu0 }
  0xeb   :  { %v184_v16 = vadd.f32 %v180_v15, %v2819_v14 }
  0xec   :  { %v2245_v17 = vpop.f32.mrf.mxu0 }
  0xed   :  { %2436 = vtanh.f32 %v184_v16  ;;  %v2112_v19 = vmul.f32 -1.442695, %v184_v16 }
  0xef   :  { %2438 = vpow2.f32 %v2112_v19 }
  0xfa   :  { %v2437_v18 = vpop.eup %2436 }
  0xfb   :  { %198 = vrot.lane.b32.xlu0 %v2437_v18, %s2660_s19 }
  0xfc   :  { %v2439_v20 = vpop.eup %2438 }
  0xfd   :  { %v188_v21 = vadd.f32 1.0, %v2439_v20 }
  0xff   :  { %2440 = vrcp.f32 %v188_v21 }
 0x10c   :  { %v2441_v22 = vpop.eup %2440 }
 0x10d   :  { %v196_v26 = vmul.f32 %v2441_v22, %v194_v25 }
 0x16d   :  { %v199_v23 = vpop.permute.xlu0 %198 }
 0x16e   :  { %v201_v24 = vmul.f32 %v2441_v22, %v199_v23 }
 0x170   :  { %203 = vrot.lane.b32.xlu1 %v201_v24, %s2659_s29 }
 0x1e2   :  { %v204_v27 = vpop.permute.xlu1 %203 }
 0x1e3   :  { %v206_v28 = vadd.f32 %v204_v27, %v196_v26 }
 0x1e5   :  { %2442 = vtanh.f32 %v206_v28  ;;  %v303_v44 = vrot.slane %v206_v28, 6 }
 0x1f2   :  { %v2443_v29 = vpop.eup %2442 }
 0x1f3   :  { %209 = vrot.lane.b32.xlu0 %v2443_v29, %s2660_s19 }
 0x265   :  { %v210_v30 = vpop.permute.xlu0 %209 }
 0x266   :  { %v212_v31 = vmul.f32 %v2441_v22, %v210_v30 }
 0x268   :  { %214 = vrot.lane.b32.xlu1 %v212_v31, %s2659_s29 }
 0x2da   :  { %v215_v32 = vpop.permute.xlu1 %214 }
 0x2db   :  { %218 = vst.msk [vmem:[#allocation2] sm:$0x3] %vm217_vm2, %v215_v32  ;;  %2255 = vmatmul.mubr.msk.f32.vlgmr.msra.gmra.mxu1 %vm110_vm1, %v215_v32  ;;  %v80_v32 = vld [vmem:[%s3168_s0 + $0x8] sm:$0xff] }
 0x2dc   :  { %2269 = vmatpush3.msra.mxu1 %v2753_v3  ;;  %2276 = vmatprep.mubr.msk.f32.mxu1 %vm2657_vm0, %v2656_v1 }
 0x2dd   :  { %2270 = vmatprep.subr.mxu1 %v2656_v1 }
 0x2de   :  { %2271 = vmatpush3.msra.mxu1 %v2758_v4 }
 0x2df   :  { %2272 = vmatprep.subr.mxu1 %v2656_v1 }
 0x2e0   :  { %2273 = vmatpush3.msra.mxu1 %v2769_v6 }
 0x2e1   :  { %2274 = vmatprep.subr.mxu1 %v2656_v1 }
 0x2e2   :  { %2275 = vmatpush3.msra.mxu1 %v2780_v8 }
 0x2e3   :  { %2290 = vmatprep.subr.mxu1 %v2656_v1 }
 0x39b   :  { %v287_v33 = vpop.f32.mrf.mxu1 }
 0x39c   :  { %v292_v34 = vrot.slane %v287_v33, 6 }
 0x39d   :  { %v2256_v35 = vpop.f32.mrf.mxu1 }
 0x39e   :  { %v294_v36 = vadd.f32 %v292_v34, %v2819_v14 }
 0x3a0   :  { %2444 = vtanh.f32 %v294_v36  ;;  %v2114_v38 = vmul.f32 -1.442695, %v294_v36 }
 0x3a2   :  { %2446 = vpow2.f32 %v2114_v38 }
 0x3ad   :  { %v2445_v37 = vpop.eup %2444 }
 0x3ae   :  { %307 = vrot.lane.b32.xlu0 %v2445_v37, %s2660_s19 }
 0x3af   :  { %v2447_v39 = vpop.eup %2446 }
 0x3b0   :  { %v298_v40 = vadd.f32 1.0, %v2447_v39 }
 0x3b2   :  { %2448 = vrcp.f32 %v298_v40 }
 0x3bf   :  { %v2449_v41 = vpop.eup %2448 }
 0x3c0   :  { %v305_v45 = vmul.f32 %v2449_v41, %v303_v44 }
 0x420   :  { %v308_v42 = vpop.permute.xlu0 %307 }
 0x421   :  { %v310_v43 = vmul.f32 %v2449_v41, %v308_v42 }
 0x423   :  { %312 = vrot.lane.b32.xlu1 %v310_v43, %s2659_s29 }
 0x495   :  { %v313_v46 = vpop.permute.xlu1 %312 }
 0x496   :  { %v315_v47 = vadd.f32 %v313_v46, %v305_v45 }
 0x498   :  { %2450 = vtanh.f32 %v315_v47  ;;  %v415_v0 = vrot.slane %v315_v47, 6 }
 0x4a5   :  { %v2451_v48 = vpop.eup %2450 }
 0x4a6   :  { %318 = vrot.lane.b32.xlu0 %v2451_v48, %s2660_s19 }
 0x518   :  { %v319_v49 = vpop.permute.xlu0 %318 }
 0x519   :  { %v2842_v50 = vmul.f32 %v2449_v41, %v319_v49 }
 0x51b   :  { %v328_v51 = vrot.slane %v2842_v50, 2 }
 0x51d   :  { %329 = vrot.lane.b32.xlu1 %v328_v51, %s2659_s29 }
 0x58f   :  { %v330_v52 = vpop.permute.xlu1 %329 }
 0x590   :  { %2266 = vmatmul.mubr.msk.f32.vlgmr.msra.gmra.mxu0 %vm110_vm1, %v330_v52 }
 0x591   :  { %2280 = vmatpush3.msra.mxu0 %v2753_v3  ;;  %2287 = vmatprep.mubr.msk.f32.mxu0 %vm2657_vm0, %v2656_v1 }
 0x592   :  { %2281 = vmatprep.subr.mxu0 %v2656_v1 }
 0x593   :  { %2282 = vmatpush3.msra.mxu0 %v2758_v4 }
 0x594   :  { %2283 = vmatprep.subr.mxu0 %v2656_v1 }
 0x595   :  { %2284 = vmatpush3.msra.mxu0 %v2769_v6 }
 0x596   :  { %2285 = vmatprep.subr.mxu0 %v2656_v1 }
 0x597   :  { %2286 = vmatpush3.msra.mxu0 %v2780_v8 }
 0x598   :  { %2301 = vmatprep.subr.mxu0 %v2656_v1 }
 0x650   :  { %v399_v53 = vpop.f32.mrf.mxu0 }
 0x651   :  { %v404_v54 = vrot.slane %v399_v53, 4 }
 0x652   :  { %v2267_v55 = vpop.f32.mrf.mxu0 }
 0x653   :  { %v406_v56 = vadd.f32 %v404_v54, %v2819_v14 }
 0x655   :  { %2452 = vtanh.f32 %v406_v56  ;;  %v2116_v58 = vmul.f32 -1.442695, %v406_v56 }
 0x657   :  { %2454 = vpow2.f32 %v2116_v58 }
 0x662   :  { %v2453_v57 = vpop.eup %2452 }
 0x663   :  { %419 = vrot.lane.b32.xlu0 %v2453_v57, %s2660_s19 }
 0x664   :  { %v2455_v59 = vpop.eup %2454 }
 0x665   :  { %v410_v60 = vadd.f32 1.0, %v2455_v59 }
 0x667   :  { %2456 = vrcp.f32 %v410_v60 }
 0x674   :  { %v2457_v61 = vpop.eup %2456 }
 0x675   :  { %v417_v2 = vmul.f32 %v2457_v61, %v415_v0 }
 0x6d5   :  { %v420_v62 = vpop.permute.xlu0 %419 }
 0x6d6   :  { %v422_v63 = vmul.f32 %v2457_v61, %v420_v62 }
 0x6d8   :  { %424 = vrot.lane.b32.xlu1 %v422_v63, %s2659_s29 }
 0x74a   :  { %v425_v5 = vpop.permute.xlu1 %424 }
 0x74b   :  { %v427_v7 = vadd.f32 %v425_v5, %v417_v2 }
 0x74d   :  { %2458 = vtanh.f32 %v427_v7  ;;  %v527_v28 = vrot.slane %v427_v7, 6 }
 0x75a   :  { %v2459_v9 = vpop.eup %2458 }
 0x75b   :  { %430 = vrot.lane.b32.xlu0 %v2459_v9, %s2660_s19 }
 0x7cd   :  { %v431_v11 = vpop.permute.xlu0 %430 }
 0x7ce   :  { %v2861_v12 = vmul.f32 %v2457_v61, %v431_v11 }
 0x7d0   :  { %v440_v15 = vrot.slane %v2861_v12, 4 }
 0x7d2   :  { %441 = vrot.lane.b32.xlu1 %v440_v15, %s2659_s29 }
 0x844   :  { %v442_v16 = vpop.permute.xlu1 %441 }
 0x845   :  { %2277 = vmatmul.mubr.msk.f32.vlgmr.msra.gmra.mxu1 %vm110_vm1, %v442_v16 }
 0x846   :  { %2291 = vmatpush3.msra.mxu1 %v2753_v3  ;;  %2298 = vmatprep.mubr.msk.f32.mxu1 %vm2657_vm0, %v2656_v1 }
 0x847   :  { %2292 = vmatprep.subr.mxu1 %v2656_v1 }
 0x848   :  { %2293 = vmatpush3.msra.mxu1 %v2758_v4 }
 0x849   :  { %2294 = vmatprep.subr.mxu1 %v2656_v1 }
 0x84a   :  { %2295 = vmatpush3.msra.mxu1 %v2769_v6 }
 0x84b   :  { %2296 = vmatprep.subr.mxu1 %v2656_v1 }
 0x84c   :  { %2297 = vmatpush3.msra.mxu1 %v2780_v8 }
 0x84d   :  { %2312 = vmatprep.subr.mxu1 %v2656_v1 }
 0x905   :  { %v511_v17 = vpop.f32.mrf.mxu1 }
 0x906   :  { %v516_v18 = vrot.slane %v511_v17, 2 }
 0x907   :  { %v2278_v19 = vpop.f32.mrf.mxu1 }
 0x908   :  { %v518_v20 = vadd.f32 %v516_v18, %v2819_v14 }
 0x90a   :  { %2460 = vtanh.f32 %v518_v20  ;;  %v2118_v22 = vmul.f32 -1.442695, %v518_v20 }
 0x90c   :  { %2462 = vpow2.f32 %v2118_v22 }
 0x917   :  { %v2461_v21 = vpop.eup %2460 }
 0x918   :  { %531 = vrot.lane.b32.xlu0 %v2461_v21, %s2660_s19 }
 0x919   :  { %v2463_v23 = vpop.eup %2462 }
 0x91a   :  { %v522_v24 = vadd.f32 1.0, %v2463_v23 }
 0x91c   :  { %2464 = vrcp.f32 %v522_v24 }
 0x929   :  { %v2465_v25 = vpop.eup %2464 }
 0x92a   :  { %v529_v29 = vmul.f32 %v2465_v25, %v527_v28 }
 0x98a   :  { %v532_v26 = vpop.permute.xlu0 %531 }
 0x98b   :  { %v534_v27 = vmul.f32 %v2465_v25, %v532_v26 }
 0x98d   :  { %536 = vrot.lane.b32.xlu1 %v534_v27, %s2659_s29 }
 0x9ff   :  { %v537_v30 = vpop.permute.xlu1 %536 }
 0xa00   :  { %v539_v31 = vadd.f32 %v537_v30, %v529_v29 }
 0xa02   :  { %2466 = vtanh.f32 %v539_v31 }
 0xa0f   :  { %v2467_v14 = vpop.eup %2466 }
 0xa10   :  { %542 = vrot.lane.b32.xlu0 %v2467_v14, %s2660_s19 }
 0xa14   :  { %89 = vperm.xlu0 %2435, %v80_v32  }
 0xa82   :  { %v543_v33 = vpop.permute.xlu0 %542 }
 0xa83   :  { %v2883_v34 = vmul.f32 %v2465_v25, %v543_v33 }
 0xa85   :  { %v552_v35 = vrot.slane %v2883_v34, 6 }
 0xa87   :  { %553 = vrot.lane.b32.xlu1 %v552_v35, %s2659_s29 }
 0xa8f   :  { %v90_v37 = vpop.permute.xlu0 %89 }
 0xa90   :  { %v99_v38 = vmul.f32 %v2810_v10, %v90_v37  ;;  %v636_v10 = vrot.slane %v539_v31, 6 }
 0xa92   :  { %v2899_v39 = vadd.f32 %v2816_v13, %v99_v38 }
 0xaf9   :  { %v554_v36 = vpop.permute.xlu1 %553 }
 0xafa   :  { %2288 = vmatmul.mubr.msk.f32.vlgmr.msra.gmra.mxu0 %vm110_vm1, %v554_v36 }
 0xafb   :  { %2302 = vmatpush3.msra.mxu0 %v2753_v3  ;;  %2309 = vmatprep.mubr.msk.f32.mxu0 %vm2657_vm0, %v2656_v1 }
 0xafc   :  { %2303 = vmatprep.subr.mxu0 %v2656_v1 }
 0xafd   :  { %2304 = vmatpush3.msra.mxu0 %v2758_v4 }
 0xafe   :  { %2305 = vmatprep.subr.mxu0 %v2656_v1 }
 0xaff   :  { %2306 = vmatpush3.msra.mxu0 %v2769_v6 }
 0xb00   :  { %2307 = vmatprep.subr.mxu0 %v2656_v1 }
 0xb01   :  { %2308 = vmatpush3.msra.mxu0 %v2780_v8 }
 0xbba   :  { %v623_v40 = vpop.f32.mrf.mxu0 }
 0xbbb   :  { %v627_v41 = vadd.f32 %v623_v40, %v2899_v39 }
 0xbbc   :  { %v2289_v42 = vpop.f32.mrf.mxu0 }
 0xbbd   :  { %2468 = vtanh.f32 %v627_v41  ;;  %v2120_v44 = vmul.f32 -1.442695, %v627_v41 }
 0xbbf   :  { %2470 = vpow2.f32 %v2120_v44 }
 0xbca   :  { %v2469_v43 = vpop.eup %2468 }
 0xbcb   :  { %640 = vrot.lane.b32.xlu1 %v2469_v43, %s2660_s19 }
 0xbcc   :  { %v2471_v45 = vpop.eup %2470 }
 0xbcd   :  { %v631_v46 = vadd.f32 1.0, %v2471_v45 }
 0xbcf   :  { %2472 = vrcp.f32 %v631_v46 }
 0xbdc   :  { %v2473_v47 = vpop.eup %2472 }
 0xbdd   :  { %v638_v13 = vmul.f32 %v2473_v47, %v636_v10 }
 0xc3d   :  { %v641_v48 = vpop.permute.xlu1 %640 }
 0xc3e   :  { %v643_v49 = vmul.f32 %v2473_v47, %v641_v48 }
 0xc40   :  { %645 = vrot.lane.b32.xlu0 %v643_v49, %s2659_s29 }
 0xcb2   :  { %v646_v51 = vpop.permute.xlu0 %645 }
 0xcb3   :  { %v648_v52 = vadd.f32 %v646_v51, %v638_v13 }
 0xcb5   :  { %2474 = vtanh.f32 %v648_v52 }
 0xcc2   :  { %v2475_v53 = vpop.eup %2474 }
 0xcc3   :  { %651 = vrot.lane.b32.xlu1 %v2475_v53, %s2660_s19 }
 0xd35   :  { %v652_v54 = vpop.permute.xlu1 %651 }
 0xd36   :  { %v654_v55 = vmul.f32 %v2473_v47, %v652_v54  ;;  %v1006_v54 = vld [vmem:[#allocation4 + $0x18] sm:$0xff] }
 0xd37   :  { %2323 = vmatprep.subr.mxu0 %v1006_v54 }
 0xd38   :  { %656 = vrot.lane.b32.xlu0 %v654_v55, %s2659_s29  ;;  %v1005_v55 = vld [vmem:[#allocation4 + $0x10] sm:$0xff] }
 0xdaa   :  { %v657_v56 = vpop.permute.xlu0 %656 }
 0xdab   :  { %659 = vst.msk [vmem:[#allocation2 + $0x8] sm:$0x3] %vm217_vm2, %v657_v56  ;;  %2299 = vmatmul.mubr.msk.f32.vlgmr.msra.gmra.mxu1 %vm110_vm1, %v657_v56  ;;  %v2954_v56 = vld [vmem:[#allocation7 + $0x18] sm:$0xff] }
 0xdac   :  { %2313 = vmatpush3.msra.mxu1 %v2753_v3  ;;  %2320 = vmatprep.mubr.msk.f32.mxu1 %vm2657_vm0, %v2656_v1 }
 0xdad   :  { %2314 = vmatprep.subr.mxu1 %v2656_v1 }
 0xdae   :  { %2315 = vmatpush3.msra.mxu1 %v2758_v4 }
 0xdaf   :  { %2316 = vmatprep.subr.mxu1 %v2656_v1 }
 0xdb0   :  { %2317 = vmatpush3.msra.mxu1 %v2769_v6 }
 0xdb1   :  { %2318 = vmatprep.subr.mxu1 %v2656_v1 }
 0xdb2   :  { %2319 = vmatpush3.msra.mxu1 %v2780_v8  ;;  %v744_v8 = vrot.slane %v648_v52, 6 }
 0xdb3   :  { %2334 = vmatprep.subr.mxu1 %v2656_v1 }
 0xe6b   :  { %v728_v57 = vpop.f32.mrf.mxu1 }
 0xe6c   :  { %v733_v58 = vrot.slane %v728_v57, 6  ;;  %v1004_v57 = vld [vmem:[#allocation4 + $0x8] sm:$0xff] }
 0xe6d   :  { %v2300_v3 = vpop.f32.mrf.mxu1 }
 0xe6e   :  { %v735_v59 = vadd.f32 %v733_v58, %v2899_v39  ;;  %v2957_v58 = vld [vmem:[#allocation7 + $0x10] sm:$0xff]  ;;  %v2960_v3 = vld [vmem:[#allocation7 + $0x8] sm:$0xff] }
 0xe70   :  { %2476 = vtanh.f32 %v735_v59  ;;  %v2122_v4 = vmul.f32 -1.442695, %v735_v59  ;;  %v2966_v59 = vld [vmem:[#allocation7] sm:$0xff] }
 0xe72   :  { %2478 = vpow2.f32 %v2122_v4 }
 0xe7d   :  { %v2477_v60 = vpop.eup %2476 }
 0xe7e   :  { %748 = vrot.lane.b32.xlu1 %v2477_v60, %s2660_s19  ;;  %v2130_v60 = vld [vmem:[%s3177_s9 + $0x2] sm:$0x3] }
 0xe7f   :  { %v2479_v61 = vpop.eup %2478 }
 0xe80   :  { %v739_v62 = vadd.f32 1.0, %v2479_v61 }
 0xe82   :  { %2480 = vrcp.f32 %v739_v62 }
 0xe8f   :  { %v2481_v6 = vpop.eup %2480 }
 0xe90   :  { %v746_v2 = vmul.f32 %v2481_v6, %v744_v8 }
 0xef0   :  { %v749_v63 = vpop.permute.xlu1 %748 }
 0xef1   :  { %v751_v0 = vmul.f32 %v2481_v6, %v749_v63 }
 0xef3   :  { %753 = vrot.lane.b32.xlu0 %v751_v0, %s2659_s29 }
 0xf65   :  { %v754_v5 = vpop.permute.xlu0 %753 }
 0xf66   :  { %v756_v7 = vadd.f32 %v754_v5, %v746_v2 }
 0xf68   :  { %2482 = vtanh.f32 %v756_v7  ;;  %v855_v29 = vrot.slane %v756_v7, 6 }
 0xf75   :  { %v2483_v9 = vpop.eup %2482 }
 0xf76   :  { %759 = vrot.lane.b32.xlu1 %v2483_v9, %s2660_s19  ;;  %v2127_v9 = vld [vmem:[%s3174_s6] ss:$0 sm:$0xff] }
 0xfe8   :  { %v760_v11 = vpop.permute.xlu1 %759 }
 0xfe9   :  { %v2922_v15 = vmul.f32 %v2481_v6, %v760_v11  ;;  %v2131_v6 = vld [vmem:[%s3178_s10 + $0x2] sm:$0x3] }
 0xfeb   :  { %v768_v16 = vrot.slane %v2922_v15, 2 }
 0xfed   :  { %769 = vrot.lane.b32.xlu0 %v768_v16, %s2659_s29 }
0x105f   :  { %v770_v17 = vpop.permute.xlu0 %769 }
0x1060   :  { %2310 = vmatmul.mubr.msk.f32.vlgmr.msra.gmra.mxu0 %vm110_vm1, %v770_v17 }
0x1061   :  { %2324 = vmatpush3.msra.mxu0 %v1006_v54 }
0x1062   :  { %2325 = vmatprep.subr.mxu0 %v1005_v55 }
0x1063   :  { %2326 = vmatpush3.msra.mxu0 %v1005_v55 }
0x1064   :  { %2327 = vmatprep.subr.mxu0 %v1004_v57 }
0x1065   :  { %2328 = vmatpush3.msra.mxu0 %v1004_v57 }
0x1120   :  { %v839_v18 = vpop.f32.mrf.mxu0 }
0x1121   :  { %v844_v19 = vrot.slane %v839_v18, 4 }
0x1122   :  { %v2311_v20 = vpop.f32.mrf.mxu0 }
0x1123   :  { %v846_v21 = vadd.f32 %v844_v19, %v2899_v39 }
0x1125   :  { %2484 = vtanh.f32 %v846_v21  ;;  %v2124_v23 = vmul.f32 -1.442695, %v846_v21 }
0x1127   :  { %2486 = vpow2.f32 %v2124_v23 }
0x1132   :  { %v2485_v22 = vpop.eup %2484 }
0x1133   :  { %859 = vrot.lane.b32.xlu1 %v2485_v22, %s2660_s19 }
0x1134   :  { %v2487_v24 = vpop.eup %2486 }
0x1135   :  { %v850_v25 = vadd.f32 1.0, %v2487_v24 }
0x1137   :  { %2488 = vrcp.f32 %v850_v25 }
0x1144   :  { %v2489_v26 = vpop.eup %2488 }
0x1145   :  { %v857_v30 = vmul.f32 %v2489_v26, %v855_v29 }
0x11a5   :  { %v860_v27 = vpop.permute.xlu1 %859 }
0x11a6   :  { %v862_v28 = vmul.f32 %v2489_v26, %v860_v27 }
0x11a8   :  { %864 = vrot.lane.b32.xlu0 %v862_v28, %s2659_s29 }
0x121a   :  { %v865_v31 = vpop.permute.xlu0 %864 }
0x121b   :  { %v867_v14 = vadd.f32 %v865_v31, %v857_v30 }
0x121d   :  { %2490 = vtanh.f32 %v867_v14 }
0x122a   :  { %v2491_v32 = vpop.eup %2490 }
0x122b   :  { %870 = vrot.lane.b32.xlu1 %v2491_v32, %s2660_s19 }
0x129d   :  { %v871_v33 = vpop.permute.xlu1 %870 }
0x129e   :  { %v873_v35 = vmul.f32 %v2489_v26, %v871_v33 }
0x12a0   :  { %v879_v36 = vrot.slane %v873_v35, 4 }
0x12a2   :  { %880 = vrot.lane.b32.xlu0 %v879_v36, %s2659_s29 }
0x1314   :  { %v881_v37 = vpop.permute.xlu0 %880 }
0x1315   :  { %2321 = vmatmul.mubr.msk.f32.vlgmr.msra.gmra.mxu1 %vm110_vm1, %v881_v37 }
0x1316   :  { %2342 = vmatprep.mubr.msk.f32.mxu1 %vm2657_vm0, %v2656_v1  ;;  %2335 = vmatpush3.msra.mxu1 %v2954_v56 }
0x1317   :  { %2336 = vmatprep.subr.mxu1 %v2656_v1 }
0x1318   :  { %2337 = vmatpush3.msra.mxu1 %v2957_v58 }
0x1319   :  { %2338 = vmatprep.subr.mxu1 %v2656_v1 }
0x131a   :  { %2339 = vmatpush3.msra.mxu1 %v2960_v3 }
0x131b   :  { %2340 = vmatprep.subr.mxu1 %v2656_v1 }
0x131c   :  { %2341 = vmatpush3.msra.mxu1 %v2966_v59 }
0x131d   :  { %2343 = vmatmul.mubr.msk.f32.vlgmr.msra.gmra.mxu1 %vm110_vm1, %v2130_v60  ;;  %2356 = vmatprep.subr.mxu1 %v2656_v1 }
0x131e   :  { %2357 = vmatpush3.msra.mxu1 %v2954_v56  ;;  %2364 = vmatprep.mubr.msk.f32.mxu1 %vm2657_vm0, %v2656_v1 }
0x131f   :  { %2358 = vmatprep.subr.mxu1 %v2656_v1 }
0x1320   :  { %2359 = vmatpush3.msra.mxu1 %v2957_v58 }
0x1321   :  { %2360 = vmatprep.subr.mxu1 %v2656_v1 }
0x1322   :  { %2361 = vmatpush3.msra.mxu1 %v2960_v3 }
0x1323   :  { %2362 = vmatprep.subr.mxu1 %v2656_v1 }
0x1324   :  { %2363 = vmatpush3.msra.mxu1 %v2966_v59 }
0x1325   :  { %2378 = vmatprep.subr.mxu1 %v2656_v1 }
0x13d5   :  { %v950_v38 = vpop.f32.mrf.mxu1 }
0x13d6   :  { %v955_v40 = vrot.slane %v950_v38, 2 }
0x13d7   :  { %v2322_v41 = vpop.f32.mrf.mxu1 }
0x13d8   :  { %v957_v42 = vadd.f32 %v955_v40, %v2899_v39  ;;  %v966_v39 = vrot.slane %v867_v14, 6 }
0x13da   :  { %2492 = vtanh.f32 %v957_v42  ;;  %v2126_v44 = vmul.f32 -1.442695, %v957_v42 }
0x13dc   :  { %2494 = vpow2.f32 %v2126_v44 }
0x13dd   :  { %v1167_v5 = vpop.f32.mrf.mxu1 }
0x13df   :  { %v2344_v7 = vpop.f32.mrf.mxu1 }
0x13e7   :  { %v2493_v43 = vpop.eup %2492 }
0x13e8   :  { %970 = vrot.lane.b32.xlu1 %v2493_v43, %s2660_s19 }
0x13e9   :  { %v2495_v45 = vpop.eup %2494 }
0x13ea   :  { %v961_v46 = vadd.f32 1.0, %v2495_v45 }
0x13ec   :  { %2496 = vrcp.f32 %v961_v46 }
0x13f9   :  { %v2497_v47 = vpop.eup %2496 }
0x13fa   :  { %v968_v10 = vmul.f32 %v2497_v47, %v966_v39 }
0x145a   :  { %v971_v48 = vpop.permute.xlu1 %970 }
0x145b   :  { %v973_v49 = vmul.f32 %v2497_v47, %v971_v48 }
0x145d   :  { %975 = vrot.lane.b32.xlu0 %v973_v49, %s2659_s29 }
0x1461   :  { %323 = vrot.lane.b32.xlu0 %v2842_v50, %s2659_s29 }
0x1465   :  { %547 = vrot.lane.b32.xlu0 %v2883_v34, %s2659_s29 }
0x1469   :  { %875 = vrot.lane.b32.xlu0 %v873_v35, %s2659_s29 }
0x14cf   :  { %v976_v13 = vpop.permute.xlu0 %975 }
0x14d0   :  { %v2943_v51 = vadd.f32 %v976_v13, %v968_v10 }
0x14d2   :  { %2498 = vtanh.f32 %v2943_v51 }
0x14d3   :  { %v324_v52 = vpop.permute.xlu0 %323 }
0x14d4   :  { %327 = vst.msk [vmem:[#allocation2] sm:$0xc] %vm326_vm3, %v324_v52 }
0x14d7   :  { %v548_v53 = vpop.permute.xlu0 %547 }
0x14d8   :  { %551 = vst.msk [vmem:[#allocation2] sm:$0xc0] %vm550_vm4, %v548_v53 }
0x14db   :  { %v876_v50 = vpop.permute.xlu0 %875 }
0x14dc   :  { %878 = vst.msk [vmem:[#allocation2 + $0x8] sm:$0x30] %vm438_vm5, %v876_v50 }
0x14df   :  { %v2499_v34 = vpop.eup %2498 }
0x14e0   :  { %981 = vrot.lane.b32.xlu1 %v2499_v34, %s2660_s19 }
0x14e4   :  { %435 = vrot.lane.b32.xlu1 %v2861_v12, %s2659_s29  ;;  %v1003_v12 = vld [vmem:[#allocation4] sm:$0xff] }
0x14e5   :  { %2329 = vmatprep.subr.mxu0 %v1003_v12 }
0x14e6   :  { %2330 = vmatpush3.msra.mxu0 %v1003_v12 }
0x14e7   :  { %2345 = vmatprep.subr.mxu0 %v2656_v1 }
0x14e8   :  { %764 = vrot.lane.b32.xlu1 %v2922_v15, %s2659_s29 }
0x1552   :  { %v982_v4 = vpop.permute.xlu1 %981 }
0x1553   :  { %v984_v61 = vmul.f32 %v2497_v47, %v982_v4 }
0x1555   :  { %986 = vrot.lane.b32.xlu1 %v984_v61, %s2659_s29 }
0x1556   :  { %v436_v62 = vpop.permute.xlu1 %435 }
0x1557   :  { %439 = vst.msk [vmem:[#allocation2] sm:$0x30] %vm438_vm5, %v436_v62 }
0x1559   :  { %1180 = vrot.lane.b32.xlu1 %v2131_v6, %s2659_s29 }
0x155a   :  { %v765_v63 = vpop.permute.xlu1 %764 }
0x155b   :  { %767 = vst.msk [vmem:[#allocation2 + $0x8] sm:$0xc] %vm326_vm3, %v765_v63 }
0x155e   :  { %v1001_v0 = vld [vmem:[#allocation2] sm:$0xff] }
0x155f   :  { %2331 = vmatprep.mubr.msk.f32.mxu0 %vm110_vm1, %v1001_v0 }
0x15c7   :  { %v987_v8 = vpop.permute.xlu1 %986 }
0x15c8   :  { %989 = vst.msk [vmem:[#allocation2 + $0x8] sm:$0xc0] %vm550_vm4, %v987_v8  ;;  %990 = vst.msk [vmem:[#allocation9 - $0x6] sm:$0xc0] %vm550_vm4, %v987_v8 }
0x15cb   :  { %v1181_v26 = vpop.permute.xlu1 %1180 }
0x15cf   :  { %v1002_v2 = vld [vmem:[#allocation2 + $0x8] sm:$0xff] }
0x15d0   :  { %2332 = vmatmul.mubr.msk.f32.vlgmr.msra.gmra.mxu0 %vm110_vm1, %v1002_v2 }
0x15d1   :  { %2346 = vmatpush3.msra.mxu0 %v2954_v56  ;;  %2353 = vmatprep.mubr.msk.f32.mxu0 %vm2657_vm0, %v2656_v1 }
0x15d2   :  { %2347 = vmatprep.subr.mxu0 %v2656_v1 }
0x15d3   :  { %2348 = vmatpush3.msra.mxu0 %v2957_v58 }
0x15d4   :  { %2349 = vmatprep.subr.mxu0 %v2656_v1 }
0x15d5   :  { %2350 = vmatpush3.msra.mxu0 %v2960_v3 }
0x15d6   :  { %2351 = vmatprep.subr.mxu0 %v2656_v1 }
0x15d7   :  { %2352 = vmatpush3.msra.mxu0 %v2966_v59 }
0x15d8   :  { %2367 = vmatprep.subr.mxu0 %v2656_v1 }
0x1690   :  { %v2333_v11 = vpop.f32.mrf.mxu0 }
0x1691   :  { %v3009_v15 = vadd.f32 %v2333_v11, %v2127_v9 }
0x1692   :  { %v1085_v16 = vpop.f32.mrf.mxu0 }
0x1693   :  { %v3011_v17 = vadd.f32 %v2127_v9, %v1085_v16 }
0x1695   :  { %v1171_v18 = vadd.f32 %v1167_v5, %v3011_v17 }
0x1697   :  { %2500 = vtanh.f32 %v1171_v18  ;;  %v2133_v20 = vmul.f32 -1.442695, %v1171_v18 }
0x1699   :  { %2502 = vpow2.f32 %v2133_v20 }
0x16a4   :  { %v2501_v19 = vpop.eup %2500 }
0x16a5   :  { %1185 = vrot.lane.b32.xlu0 %v2501_v19, %s2660_s19 }
0x16a6   :  { %v2503_v21 = vpop.eup %2502 }
0x16a7   :  { %v1175_v22 = vadd.f32 1.0, %v2503_v21 }
0x16a9   :  { %2504 = vrcp.f32 %v1175_v22 }
0x16b6   :  { %v2505_v23 = vpop.eup %2504 }
0x16b7   :  { %v1183_v27 = vmul.f32 %v2505_v23, %v1181_v26 }
0x1717   :  { %v1186_v24 = vpop.permute.xlu0 %1185 }
0x1718   :  { %v1188_v25 = vmul.f32 %v2505_v23, %v1186_v24 }
0x171a   :  { %1190 = vrot.lane.b32.xlu0 %v1188_v25, %s2659_s29 }
0x178c   :  { %v1191_v28 = vpop.permute.xlu0 %1190 }
0x178d   :  { %v1193_v29 = vadd.f32 %v1191_v28, %v1183_v27 }
0x178f   :  { %2506 = vtanh.f32 %v1193_v29  ;;  %v1297_v46 = vrot.slane %v1193_v29, 6 }
0x179c   :  { %v2507_v30 = vpop.eup %2506 }
0x179d   :  { %1196 = vrot.lane.b32.xlu1 %v2507_v30, %s2660_s19 }
0x180f   :  { %v1197_v31 = vpop.permute.xlu1 %1196 }
0x1810   :  { %v3017_v14 = vmul.f32 %v2505_v23, %v1197_v31 }
0x1812   :  { %1211 = vrot.lane.b32.xlu0 %v3017_v14, %s2659_s29 }
0x1884   :  { %v1212_v32 = vpop.permute.xlu0 %1211 }
0x1885   :  { %2354 = vmatmul.mubr.msk.f32.vlgmr.msra.gmra.mxu0 %vm110_vm1, %v1212_v32 }
0x1886   :  { %2368 = vmatpush3.msra.mxu0 %v2954_v56  ;;  %2375 = vmatprep.mubr.msk.f32.mxu0 %vm2657_vm0, %v2656_v1 }
0x1887   :  { %2369 = vmatprep.subr.mxu0 %v2656_v1 }
0x1888   :  { %2370 = vmatpush3.msra.mxu0 %v2957_v58 }
0x1889   :  { %2371 = vmatprep.subr.mxu0 %v2656_v1 }
0x188a   :  { %2372 = vmatpush3.msra.mxu0 %v2960_v3 }
0x188b   :  { %2373 = vmatprep.subr.mxu0 %v2656_v1 }
0x188c   :  { %2374 = vmatpush3.msra.mxu0 %v2966_v59 }
0x188d   :  { %2389 = vmatprep.subr.mxu0 %v2656_v1 }
0x1945   :  { %v1281_v33 = vpop.f32.mrf.mxu0 }
0x1946   :  { %v1286_v35 = vrot.slane %v1281_v33, 6 }
0x1947   :  { %v2355_v36 = vpop.f32.mrf.mxu0 }
0x1948   :  { %v1288_v37 = vadd.f32 %v1286_v35, %v3011_v17 }
0x194a   :  { %2508 = vtanh.f32 %v1288_v37  ;;  %v2135_v40 = vmul.f32 -1.442695, %v1288_v37 }
0x194c   :  { %2510 = vpow2.f32 %v2135_v40 }
0x1957   :  { %v2509_v38 = vpop.eup %2508 }
0x1958   :  { %1301 = vrot.lane.b32.xlu1 %v2509_v38, %s2660_s19 }
0x1959   :  { %v2511_v41 = vpop.eup %2510 }
0x195a   :  { %v1292_v42 = vadd.f32 1.0, %v2511_v41 }
0x195c   :  { %2512 = vrcp.f32 %v1292_v42 }
0x1969   :  { %v2513_v43 = vpop.eup %2512 }
0x196a   :  { %v1299_v47 = vmul.f32 %v2513_v43, %v1297_v46 }
0x19ca   :  { %v1302_v44 = vpop.permute.xlu1 %1301 }
0x19cb   :  { %v1304_v45 = vmul.f32 %v2513_v43, %v1302_v44 }
0x19cd   :  { %1306 = vrot.lane.b32.xlu0 %v1304_v45, %s2659_s29 }
0x1a3f   :  { %v1307_v48 = vpop.permute.xlu0 %1306 }
0x1a40   :  { %v1309_v49 = vadd.f32 %v1307_v48, %v1299_v47 }
0x1a42   :  { %2514 = vtanh.f32 %v1309_v49  ;;  %v1417_v63 = vrot.slane %v1309_v49, 6 }
0x1a4f   :  { %v2515_v39 = vpop.eup %2514 }
0x1a50   :  { %1312 = vrot.lane.b32.xlu1 %v2515_v39, %s2660_s19 }
0x1ac2   :  { %v1313_v10 = vpop.permute.xlu1 %1312 }
0x1ac3   :  { %v3036_v13 = vmul.f32 %v2513_v43, %v1313_v10 }
0x1ac5   :  { %v1330_v52 = vrot.slane %v3036_v13, 2 }
0x1ac7   :  { %1331 = vrot.lane.b32.xlu0 %v1330_v52, %s2659_s29 }
0x1b39   :  { %v1332_v53 = vpop.permute.xlu0 %1331 }
0x1b3a   :  { %2365 = vmatmul.mubr.msk.f32.vlgmr.msra.gmra.mxu1 %vm110_vm1, %v1332_v53 }
0x1b3b   :  { %2379 = vmatpush3.msra.mxu1 %v2954_v56  ;;  %2386 = vmatprep.mubr.msk.f32.mxu1 %vm2657_vm0, %v2656_v1 }
0x1b3c   :  { %2380 = vmatprep.subr.mxu1 %v2656_v1 }
0x1b3d   :  { %2381 = vmatpush3.msra.mxu1 %v2957_v58 }
0x1b3e   :  { %2382 = vmatprep.subr.mxu1 %v2656_v1 }
0x1b3f   :  { %2383 = vmatpush3.msra.mxu1 %v2960_v3 }
0x1b40   :  { %2384 = vmatprep.subr.mxu1 %v2656_v1 }
0x1b41   :  { %2385 = vmatpush3.msra.mxu1 %v2966_v59 }
0x1b42   :  { %2400 = vmatprep.subr.mxu1 %v2656_v1 }
0x1bfa   :  { %v1401_v50 = vpop.f32.mrf.mxu1 }
0x1bfb   :  { %v1406_v34 = vrot.slane %v1401_v50, 4 }
0x1bfc   :  { %v2366_v54 = vpop.f32.mrf.mxu1 }
0x1bfd   :  { %v1408_v55 = vadd.f32 %v1406_v34, %v3011_v17 }
0x1bff   :  { %2516 = vtanh.f32 %v1408_v55  ;;  %v2137_v12 = vmul.f32 -1.442695, %v1408_v55 }
0x1c01   :  { %2518 = vpow2.f32 %v2137_v12 }
0x1c0c   :  { %v2517_v57 = vpop.eup %2516 }
0x1c0d   :  { %1421 = vrot.lane.b32.xlu1 %v2517_v57, %s2660_s19 }
0x1c0e   :  { %v2519_v60 = vpop.eup %2518 }
0x1c0f   :  { %v1412_v4 = vadd.f32 1.0, %v2519_v60 }
0x1c11   :  { %2520 = vrcp.f32 %v1412_v4 }
0x1c1e   :  { %v2521_v61 = vpop.eup %2520 }
0x1c1f   :  { %v1419_v0 = vmul.f32 %v2521_v61, %v1417_v63 }
0x1c7f   :  { %v1422_v62 = vpop.permute.xlu1 %1421 }
0x1c80   :  { %v1424_v6 = vmul.f32 %v2521_v61, %v1422_v62 }
0x1c82   :  { %1426 = vrot.lane.b32.xlu0 %v1424_v6, %s2659_s29 }
0x1cf4   :  { %v1427_v8 = vpop.permute.xlu0 %1426 }
0x1cf5   :  { %v1429_v2 = vadd.f32 %v1427_v8, %v1419_v0 }
0x1cf7   :  { %2522 = vtanh.f32 %v1429_v2  ;;  %v1537_v29 = vrot.slane %v1429_v2, 6 }
0x1d04   :  { %v2523_v5 = vpop.eup %2522 }
0x1d05   :  { %1432 = vrot.lane.b32.xlu1 %v2523_v5, %s2660_s19 }
0x1d77   :  { %v1433_v7 = vpop.permute.xlu1 %1432 }
0x1d78   :  { %v3055_v9 = vmul.f32 %v2521_v61, %v1433_v7 }
0x1d7a   :  { %v1450_v11 = vrot.slane %v3055_v9, 4 }
0x1d7c   :  { %1451 = vrot.lane.b32.xlu0 %v1450_v11, %s2659_s29 }
0x1dee   :  { %v1452_v16 = vpop.permute.xlu0 %1451 }
0x1def   :  { %2376 = vmatmul.mubr.msk.f32.vlgmr.msra.gmra.mxu0 %vm110_vm1, %v1452_v16 }
0x1df0   :  { %2390 = vmatpush3.msra.mxu0 %v2954_v56  ;;  %2397 = vmatprep.mubr.msk.f32.mxu0 %vm2657_vm0, %v2656_v1 }
0x1df1   :  { %2391 = vmatprep.subr.mxu0 %v2656_v1 }
0x1df2   :  { %2392 = vmatpush3.msra.mxu0 %v2957_v58 }
0x1df3   :  { %2393 = vmatprep.subr.mxu0 %v2656_v1 }
0x1df4   :  { %2394 = vmatpush3.msra.mxu0 %v2960_v3 }
0x1df5   :  { %2395 = vmatprep.subr.mxu0 %v2656_v1 }
0x1df6   :  { %2396 = vmatpush3.msra.mxu0 %v2966_v59 }
0x1df7   :  { %2411 = vmatprep.subr.mxu0 %v2656_v1 }
0x1eaf   :  { %v1521_v18 = vpop.f32.mrf.mxu0 }
0x1eb0   :  { %v1526_v19 = vrot.slane %v1521_v18, 2 }
0x1eb1   :  { %v2377_v20 = vpop.f32.mrf.mxu0 }
0x1eb2   :  { %v1528_v21 = vadd.f32 %v1526_v19, %v3011_v17 }
0x1eb4   :  { %2524 = vtanh.f32 %v1528_v21  ;;  %v2139_v23 = vmul.f32 -1.442695, %v1528_v21 }
0x1eb6   :  { %2526 = vpow2.f32 %v2139_v23 }
0x1ec1   :  { %v2525_v22 = vpop.eup %2524 }
0x1ec2   :  { %1541 = vrot.lane.b32.xlu1 %v2525_v22, %s2660_s19 }
0x1ec3   :  { %v2527_v24 = vpop.eup %2526 }
0x1ec4   :  { %v1532_v25 = vadd.f32 1.0, %v2527_v24 }
0x1ec6   :  { %2528 = vrcp.f32 %v1532_v25 }
0x1ed3   :  { %v2529_v26 = vpop.eup %2528 }
0x1ed4   :  { %v1539_v30 = vmul.f32 %v2529_v26, %v1537_v29 }
0x1f34   :  { %v1542_v27 = vpop.permute.xlu1 %1541 }
0x1f35   :  { %v1544_v28 = vmul.f32 %v2529_v26, %v1542_v27 }
0x1f37   :  { %1546 = vrot.lane.b32.xlu0 %v1544_v28, %s2659_s29 }
0x1fa9   :  { %v1547_v31 = vpop.permute.xlu0 %1546 }
0x1faa   :  { %v1549_v32 = vadd.f32 %v1547_v31, %v1539_v30 }
0x1fac   :  { %2530 = vtanh.f32 %v1549_v32  ;;  %v1654_v49 = vrot.slane %v1549_v32, 6 }
0x1fb9   :  { %v2531_v17 = vpop.eup %2530 }
0x1fba   :  { %1552 = vrot.lane.b32.xlu1 %v2531_v17, %s2660_s19 }
0x202c   :  { %v1553_v33 = vpop.permute.xlu1 %1552 }
0x202d   :  { %v3074_v35 = vmul.f32 %v2529_v26, %v1553_v33 }
0x202f   :  { %v1570_v36 = vrot.slane %v3074_v35, 6 }
0x2031   :  { %1571 = vrot.lane.b32.xlu0 %v1570_v36, %s2659_s29 }
0x20a3   :  { %v1572_v37 = vpop.permute.xlu0 %1571 }
0x20a4   :  { %2387 = vmatmul.mubr.msk.f32.vlgmr.msra.gmra.mxu1 %vm110_vm1, %v1572_v37 }
0x20a5   :  { %2401 = vmatpush3.msra.mxu1 %v2954_v56  ;;  %2408 = vmatprep.mubr.msk.f32.mxu1 %vm2657_vm0, %v2656_v1 }
0x20a6   :  { %2402 = vmatprep.subr.mxu1 %v2656_v1 }
0x20a7   :  { %2403 = vmatpush3.msra.mxu1 %v2957_v58 }
0x20a8   :  { %2404 = vmatprep.subr.mxu1 %v2656_v1 }
0x20a9   :  { %2405 = vmatpush3.msra.mxu1 %v2960_v3 }
0x20aa   :  { %2406 = vmatprep.subr.mxu1 %v2656_v1 }
0x20ab   :  { %2407 = vmatpush3.msra.mxu1 %v2966_v59 }
0x2164   :  { %v1641_v38 = vpop.f32.mrf.mxu1 }
0x2165   :  { %v1645_v40 = vadd.f32 %v1641_v38, %v3009_v15 }
0x2166   :  { %v2388_v41 = vpop.f32.mrf.mxu1 }
0x2167   :  { %2532 = vtanh.f32 %v1645_v40  ;;  %v2141_v43 = vmul.f32 -1.442695, %v1645_v40 }
0x2169   :  { %2534 = vpow2.f32 %v2141_v43  ;;  %v1200_v43 = vlaneseq }
0x2174   :  { %v2533_v42 = vpop.eup %2532 }
0x2175   :  { %1658 = vrot.lane.b32.xlu1 %v2533_v42, %s2660_s19 }
0x2176   :  { %v2535_v44 = vpop.eup %2534 }
0x2177   :  { %v1649_v45 = vadd.f32 1.0, %v2535_v44  ;;  %v1201_v44 = vshrl.u32 %v1200_v43, 7 }
0x2179   :  { %2536 = vrcp.f32 %v1649_v45  ;;  %v1318_v45 = vsub.s32 1, %v1201_v44 }
0x2186   :  { %v2537_v46 = vpop.eup %2536 }
0x2187   :  { %v1656_v39 = vmul.f32 %v2537_v46, %v1654_v49  ;;  %v1438_v49 = vsub.s32 2, %v1201_v44 }
0x21e7   :  { %v1659_v47 = vpop.permute.xlu1 %1658 }
0x21e8   :  { %v1661_v48 = vmul.f32 %v2537_v46, %v1659_v47 }
0x21ea   :  { %1663 = vrot.lane.b32.xlu0 %v1661_v48, %s2659_s29 }
0x225c   :  { %v1664_v10 = vpop.permute.xlu0 %1663 }
0x225d   :  { %v1666_v52 = vadd.f32 %v1664_v10, %v1656_v39  ;;  %v1675_v10 = vsub.s32 4, %v1201_v44 }
0x225f   :  { %2538 = vtanh.f32 %v1666_v52 }
0x226c   :  { %v2539_v53 = vpop.eup %2538 }
0x226d   :  { %1669 = vrot.lane.b32.xlu1 %v2539_v53, %s2660_s19 }
0x22df   :  { %v1670_v50 = vpop.permute.xlu1 %1669 }
0x22e0   :  { %v3092_v34 = vmul.f32 %v2537_v46, %v1670_v50  ;;  %v73_v46 = vld [vmem:[%s3175_s7] sm:$0xff]  ;;  %s2662_s7 = smov [#allocation9]  }
0x22e1   :  { %v1319_v48 = vrot.slane %v73_v46, %v1318_v45  ;;  %v1439_v39 = vrot.slane %v73_v46, %v1438_v49  ;;  %s2078_s23 = sshll.u32 %s2662_s7, 4  ;;  %s2079_s23 = int_to_ptr.vmem [resolvable:$true] %s2078_s23 }
0x22e2   :  { %1684 = vrot.lane.b32.xlu0 %v3092_v34, %s2659_s29  ;;  %s2604_s26 = scalar_lea.vmem %s2079_s23, 64  ;;  %p2609_p11 = scmp.lt.s32.totalorder %s2079_s23, %s2079_s23 }
0x22e3   :  { %p2605_p10 = scmp.ne.s32.totalorder %s2079_s23, %s2604_s26  ;;  %p2610_p12 = scmp.lt.s32.totalorder %s2604_s26, %s2604_s26 }
0x22e5   :  { %p2611_p13 = por %p2610_p12, %p2609_p11 }
0x22e7   :  { %p2612_p0 = pnand %p2611_p13, %p2605_p10 }
0x2354   :  { %v1685_v54 = vpop.permute.xlu0 %1684 }
0x2355   :  { %2398 = vmatmul.mubr.msk.f32.vlgmr.msra.gmra.mxu0 %vm110_vm1, %v1685_v54 }
0x2356   :  { %2412 = vmatpush3.msra.mxu0 %v2954_v56  ;;  %2419 = vmatprep.mubr.msk.f32.mxu0 %vm2657_vm0, %v2656_v1 }
0x2357   :  { %2413 = vmatprep.subr.mxu0 %v2656_v1 }
0x2358   :  { %2414 = vmatpush3.msra.mxu0 %v2957_v58 }
0x2359   :  { %2415 = vmatprep.subr.mxu0 %v2656_v1 }
0x235a   :  { %2416 = vmatpush3.msra.mxu0 %v2960_v3 }
0x235b   :  { %2417 = vmatprep.subr.mxu0 %v2656_v1  ;;  %v1770_v1 = vrot.slane %v1666_v52, 6  ;;  %v1911_v52 = vsub.s32 6, %v1201_v44 }
0x235c   :  { %2418 = vmatpush3.msra.mxu0 %v2966_v59 }
0x235d   :  { %v1912_v53 = vrot.slane %v73_v46, %v1911_v52 }
0x2415   :  { %v1754_v55 = vpop.f32.mrf.mxu0 }
0x2416   :  { %v1759_v57 = vrot.slane %v1754_v55, 6 }
0x2417   :  { %v2399_v12 = vpop.f32.mrf.mxu0 }
0x2418   :  { %v1761_v56 = vadd.f32 %v1759_v57, %v3009_v15  ;;  %v1202_v57 = vsub.s32 0, %v1201_v44 }
0x241a   :  { %2540 = vtanh.f32 %v1761_v56  ;;  %v2143_v4 = vmul.f32 -1.442695, %v1761_v56 }
0x241c   :  { %2542 = vpow2.f32 %v2143_v4  ;;  %v1203_v4 = vrot.slane %v73_v46, %v1202_v57 }
0x2427   :  { %v2541_v60 = vpop.eup %2540 }
0x2428   :  { %1774 = vrot.lane.b32.xlu1 %v2541_v60, %s2660_s19 }
0x2429   :  { %v2543_v58 = vpop.eup %2542 }
0x242a   :  { %v1765_v61 = vadd.f32 1.0, %v2543_v58  ;;  %v1558_v58 = vsub.s32 3, %v1201_v44 }
0x242c   :  { %2544 = vrcp.f32 %v1765_v61  ;;  %v2031_v61 = vsub.s32 7, %v1201_v44 }
0x2439   :  { %v2545_v62 = vpop.eup %2544 }
0x243a   :  { %v1772_v59 = vmul.f32 %v2545_v62, %v1770_v1 }
0x249a   :  { %v1775_v3 = vpop.permute.xlu1 %1774 }
0x249b   :  { %v1777_v6 = vmul.f32 %v2545_v62, %v1775_v3  ;;  %v1559_v3 = vrot.slane %v73_v46, %v1558_v58 }
0x249d   :  { %1779 = vrot.lane.b32.xlu0 %v1777_v6, %s2659_s29  ;;  %v1791_v6 = vsub.s32 5, %v1201_v44 }
0x249f   :  { %v1792_v1 = vrot.slane %v73_v46, %v1791_v6 }
0x250f   :  { %v1780_v63 = vpop.permute.xlu0 %1779 }
0x2510   :  { %v1782_v0 = vadd.f32 %v1780_v63, %v1772_v59 }
0x2512   :  { %2546 = vtanh.f32 %v1782_v0  ;;  %v1890_v28 = vrot.slane %v1782_v0, 6 }
0x251f   :  { %v2547_v8 = vpop.eup %2546 }
0x2520   :  { %1785 = vrot.lane.b32.xlu1 %v2547_v8, %s2660_s19 }
0x2592   :  { %v1786_v2 = vpop.permute.xlu1 %1785 }
0x2593   :  { %v3110_v5 = vmul.f32 %v2545_v62, %v1786_v2  ;;  %v2032_v62 = vrot.slane %v73_v46, %v2031_v61 }
0x2595   :  { %v1803_v7 = vrot.slane %v3110_v5, 2 }
0x2597   :  { %1804 = vrot.lane.b32.xlu0 %v1803_v7, %s2659_s29 }
0x2609   :  { %v1805_v11 = vpop.permute.xlu0 %1804 }
0x260a   :  { %2409 = vmatmul.mubr.msk.f32.vlgmr.msra.gmra.mxu1 %vm110_vm1, %v1805_v11 }
0x26ca   :  { %v1874_v16 = vpop.f32.mrf.mxu1 }
0x26cb   :  { %v1879_v18 = vrot.slane %v1874_v16, 4 }
0x26cc   :  { %v2410_v19 = vpop.f32.mrf.mxu1 }
0x26cd   :  { %v1881_v20 = vadd.f32 %v1879_v18, %v3009_v15 }
0x26cf   :  { %2548 = vtanh.f32 %v1881_v20  ;;  %v2145_v22 = vmul.f32 -1.442695, %v1881_v20 }
0x26d1   :  { %2550 = vpow2.f32 %v2145_v22 }
0x26dc   :  { %v2549_v21 = vpop.eup %2548 }
0x26dd   :  { %1894 = vrot.lane.b32.xlu1 %v2549_v21, %s2660_s19 }
0x26de   :  { %v2551_v23 = vpop.eup %2550 }
0x26df   :  { %v1885_v24 = vadd.f32 1.0, %v2551_v23 }
0x26e1   :  { %2552 = vrcp.f32 %v1885_v24 }
0x26ee   :  { %v2553_v25 = vpop.eup %2552 }
0x26ef   :  { %v1892_v29 = vmul.f32 %v2553_v25, %v1890_v28 }
0x274f   :  { %v1895_v26 = vpop.permute.xlu1 %1894 }
0x2750   :  { %v1897_v27 = vmul.f32 %v2553_v25, %v1895_v26 }
0x2752   :  { %1899 = vrot.lane.b32.xlu0 %v1897_v27, %s2659_s29 }
0x27c4   :  { %v1900_v30 = vpop.permute.xlu0 %1899 }
0x27c5   :  { %v1902_v31 = vadd.f32 %v1900_v30, %v1892_v29 }
0x27c7   :  { %2554 = vtanh.f32 %v1902_v31  ;;  %v2010_v59 = vrot.slane %v1902_v31, 6 }
0x27d4   :  { %v2555_v32 = vpop.eup %2554 }
0x27d5   :  { %1905 = vrot.lane.b32.xlu1 %v2555_v32, %s2660_s19 }
0x2847   :  { %v1906_v17 = vpop.permute.xlu1 %1905 }
0x2848   :  { %v3119_v33 = vmul.f32 %v2553_v25, %v1906_v17 }
0x284a   :  { %v1923_v36 = vrot.slane %v3119_v33, 4 }
0x284c   :  { %1924 = vrot.lane.b32.xlu0 %v1923_v36, %s2659_s29 }
0x28be   :  { %v1925_v37 = vpop.permute.xlu0 %1924 }
0x28bf   :  { %2420 = vmatmul.mubr.msk.f32.vlgmr.msra.gmra.mxu0 %vm110_vm1, %v1925_v37 }
0x297f   :  { %v1994_v38 = vpop.f32.mrf.mxu0 }
0x2980   :  { %v1999_v40 = vrot.slane %v1994_v38, 2 }
0x2981   :  { %v2421_v41 = vpop.f32.mrf.mxu0 }
0x2982   :  { %v2001_v42 = vadd.f32 %v1999_v40, %v3009_v15  ;;  %v1676_v15 = vrot.slane %v73_v46, %v1675_v10 }
0x2984   :  { %2556 = vtanh.f32 %v2001_v42  ;;  %v2147_v50 = vmul.f32 -1.442695, %v2001_v42 }
0x2986   :  { %2558 = vpow2.f32 %v2147_v50 }
0x2991   :  { %v2557_v47 = vpop.eup %2556 }
0x2992   :  { %2014 = vrot.lane.b32.xlu1 %v2557_v47, %s2660_s19 }
0x2993   :  { %v2559_v54 = vpop.eup %2558 }
0x2994   :  { %v2005_v55 = vadd.f32 1.0, %v2559_v54 }
0x2996   :  { %1321 = vrot.lane.b32.xlu1 %v1319_v48, %s2661_s22  ;;  %2560 = vrcp.f32 %v2005_v55 }
0x299a   :  { %1441 = vrot.lane.b32.xlu1 %v1439_v39, %s2661_s22 }
0x299e   :  { %1678 = vrot.lane.b32.xlu1 %v1676_v15, %s2661_s22 }
0x29a2   :  { %1914 = vrot.lane.b32.xlu1 %v1912_v53, %s2661_s22 }
0x29a3   :  { %v2561_v12 = vpop.eup %2560 }
0x29a4   :  { %v2012_v63 = vmul.f32 %v2561_v12, %v2010_v59 }
0x29a6   :  { %2034 = vrot.lane.b32.xlu1 %v2032_v62, %s2661_s22 }
0x2a04   :  { %v2015_v56 = vpop.permute.xlu1 %2014 }
0x2a05   :  { %v2017_v60 = vmul.f32 %v2561_v12, %v2015_v56 }
0x2a07   :  { %2019 = vrot.lane.b32.xlu0 %v2017_v60, %s2659_s29 }
0x2a08   :  { %v1322_v7 = vpop.permute.xlu1 %1321 }
0x2a09   :  { %v1324_v16 = vmul.f32 %v1322_v7, %v3036_v13 }
0x2a0b   :  { %1205 = vrot.lane.b32.xlu0 %v1203_v4, %s2661_s22  ;;  %v1326_v21 = vrot.slane %v1324_v16, 2 }
0x2a0c   :  { %v1442_v18 = vpop.permute.xlu1 %1441 }
0x2a0d   :  { %v1444_v22 = vmul.f32 %v1442_v18, %v3055_v9 }
0x2a0f   :  { %1561 = vrot.lane.b32.xlu0 %v1559_v3, %s2661_s22  ;;  %v1446_v25 = vrot.slane %v1444_v22, 4 }
0x2a10   :  { %v1679_v27 = vpop.permute.xlu1 %1678 }
0x2a11   :  { %v1681_v13 = vmul.f32 %v1679_v27, %v3092_v34 }
0x2a13   :  { %1794 = vrot.lane.b32.xlu0 %v1792_v1, %s2661_s22 }
0x2a14   :  { %v1915_v32 = vpop.permute.xlu1 %1914 }
0x2a18   :  { %v2035_v9 = vpop.permute.xlu1 %2034 }
0x2a79   :  { %v2020_v0 = vpop.permute.xlu0 %2019 }
0x2a7a   :  { %v2022_v8 = vadd.f32 %v2020_v0, %v2012_v63 }
0x2a7c   :  { %2562 = vtanh.f32 %v2022_v8 }
0x2a7d   :  { %v1206_v11 = vpop.permute.xlu0 %1205 }
0x2a7e   :  { %v1208_v20 = vmul.f32 %v1206_v11, %v3017_v14  ;;  %v1917_v14 = vmul.f32 %v1915_v32, %v3119_v33 }
0x2a80   :  { %v1328_v24 = vadd.f32 %v1326_v21, %v1208_v20  ;;  %v1919_v40 = vrot.slane %v1917_v14, 4 }
0x2a81   :  { %v1562_v19 = vpop.permute.xlu0 %1561 }
0x2a82   :  { %v1564_v23 = vmul.f32 %v1562_v19, %v3074_v35  ;;  %v1448_v29 = vadd.f32 %v1446_v25, %v1328_v24 }
0x2a84   :  { %v1566_v26 = vrot.slane %v1564_v23, 6 }
0x2a85   :  { %v1795_v28 = vpop.permute.xlu0 %1794 }
0x2a86   :  { %v1568_v30 = vadd.f32 %v1566_v26, %v1448_v29  ;;  %v1797_v31 = vmul.f32 %v1795_v28, %v3110_v5 }
0x2a88   :  { %v1682_v17 = vadd.f32 %v1681_v13, %v1568_v30  ;;  %v1799_v36 = vrot.slane %v1797_v31, 2 }
0x2a89   :  { %v2563_v2 = vpop.eup %2562 }
0x2a8a   :  { %2025 = vrot.lane.b32.xlu0 %v2563_v2, %s2660_s19  ;;  %v1801_v38 = vadd.f32 %v1799_v36, %v1682_v17 }
0x2a8c   :  { %v1921_v42 = vadd.f32 %v1919_v40, %v1801_v38 }
0x2afc   :  { %v2026_v37 = vpop.permute.xlu0 %2025 }
0x2afd   :  { %v2028_v35 = vmul.f32 %v2561_v12, %v2026_v37 }
0x2aff   :  { %v2037_v41 = vmul.f32 %v2035_v9, %v2028_v35 }
0x2b01   :  { %v2039_v43 = vrot.slane %v2037_v41, 6 }
0x2b03   :  { %v2041_v44 = vadd.f32 %v2039_v43, %v1921_v42 }
0x2b05   :  { %2055 = vrot.lane.b32.xlu0 %v2041_v44, %s2659_s29 }
0x2b09   :  { %992 = vrot.lane.b32.xlu0 %v2943_v51, %s2661_s22 }
0x2b0d   :  { %2043 = vrot.lane.b32.xlu0 %v2028_v35, %s2659_s29 }
0x2b11   :  { %2049 = vrot.lane.b32.xlu0 %v2022_v8, %s2661_s22 }
0x2b77   :  { %v2056_v34 = vpop.permute.xlu0 %2055 }
0x2b78   :  { %v2058_v5 = vsel %vm217_vm2, %v2056_v34, 0.0 }
0x2b79   :  { %2059 = vadd.xlane.f32.xlu1 %v2058_v5 }
0x2b7b   :  { %v993_v33 = vpop.permute.xlu0 %992 }
0x2b7c   :  { %995 = vst.msk [vmem:[#allocation10 - $0x6] sm:$0xc0] %vm550_vm4, %v993_v33 }
0x2b7f   :  { %v2044_v45 = vpop.permute.xlu0 %2043 }
0x2b80   :  { %2047 = vst.msk [vmem:[#allocation9 - $0x4] sm:$0xc0] %vm550_vm4, %v2044_v45 }
0x2b83   :  { %v2050_v46 = vpop.permute.xlu0 %2049 }
0x2b84   :  { %2053 = vst.msk [vmem:[#allocation10 - $0x4] sm:$0xc0] %vm550_vm4, %v2050_v46 }
0x2b85   :  { %2615 = shalt.err (!%p2612_p0)
}
0x2b86   :  { %s2664_s27 = smov 2   ;;  %s2624_s14 = scalar_lea.vmem %s2091_s25, 64 }
0x2b87   :  { %2084 = dma.vmem_to_hbm [thread:$0]  %s2079_s23, 64, %s3180_s12, [#allocation6], %s2659_s29, %s2659_s29, %s2664_s27  }
0x2b88   :  { %p2625_p1 = scmp.ne.s32.totalorder %s2091_s25, %s2624_s14  ;;  %p2629_p2 = scmp.lt.s32.totalorder %s2091_s25, %s2091_s25 }
0x2b89   :  { %p2630_p3 = scmp.lt.s32.totalorder %s2624_s14, %s2624_s14 }
0x2b8b   :  { %p2631_p4 = por %p2630_p3, %p2629_p2 }
0x2b8d   :  { %p2632_p5 = pnand %p2631_p4, %p2625_p1 }
0x2b8f   :  { %2635 = shalt.err (!%p2632_p5)
}
0x2b90   :  { %2096 = dma.vmem_to_hbm [thread:$0]  %s2091_s25, 64, %s3181_s13, [#allocation11], %s2659_s29, %s2659_s29, %s2664_s27   ;;  %v2148_v51 = vld [vmem:[#allocation3] ss:$0 sm:$0xff]  ;;  %vm2069_vm6 = vcmask 1024  }
0x2c02   :  { %v2060_v47 = vpop.xlane.xlu1 %2059 }
0x2c03   :  { %v2068_v48 = vadd.f32 %v2148_v51, %v2060_v47 }
0x2c05   :  { %2070 = vst.msk [vmem:[%s3179_s11] sm:$0x3] %vm2069_vm6, %v2068_v48 }
0x2c06   :  { %2648 = dma.done.wait [#allocation6], 64  }
0x2c07   :  { %2649 = vsyncadd [#allocation6], 4294967232 }
0x2c08   :  { %2650 = dma.done.wait [#allocation11], 64  }
0x2c09   :  { %2651 = vsyncadd [#allocation11], 4294967232 }
0x2c0a   :  { %2105 = vsyncpa [#allocation5], 1 }
0x2c0b   :  { %2106 = vsyncpa [#allocation8], 1 }
0x2c0c   :  { %2107 = vsyncpa [#allocation6], 1 }
0x2c0d   :  { %2108 = vsyncpa [#allocation11], 1 }

</bundles_post_ra>
